<compile_context>
chip_gen: v6e
topology: v6e:2x2x1
jax: 0.10.0
libtpu: 0.0.40
codegen_flags: <defaults>
</compile_context>

<pallas_src>
import functools

import jax
import jax.numpy as jnp
from jax.experimental import pallas as pl
from jax.experimental.pallas import tpu as pltpu

_MASK_NEG = -1e30  # additive mask value; exp() underflows to exactly 0.0 in f32


def _pick_graph_block(num_graphs, target=32):
    """Graphs per grid step: multiple of 8 (f32 sublane), capped at `target`, and small
    enough that the (padded) grid has >= 2 steps so both v7x TensorCores can be used."""
    half = (num_graphs + 1) // 2
    gb = ((half + 7) // 8) * 8
    return max(8, min(target, gb))


def _gat_kernel(x_ref, eb_ref, w_ref, b_ref, o_ref, *, n, f, hidden, num_heads):
    """One grid step = a block of `gb` independent graphs.

    x_ref : (gb, n*f)          lane-packed node features
    eb_ref: (gb, n*n)          additive attention-mask bias, packed as [dst, src]
    w_ref : (f, out + 2*heads) fused [W | W@a_src | W@a_dst]
    b_ref : (1, n*out)         output bias tiled per node
    o_ref : (gb, n*out)        lane-packed output
    """
    gb = x_ref.shape[0]
    out_dim = num_heads * hidden

    # ---- Unpack node features (gb, n*f) -> (gb*n, f) via static per-node lane slices ----
    x3 = jnp.concatenate(
        [x_ref[:, i * f:(i + 1) * f][:, None, :] for i in range(n)], axis=1)   # (gb, n, f)
    x2 = x3.reshape(gb * n, f)                                                  # leading collapse

    # ---- Fused projection: features + both attention scores in one MXU pass ----
    proj = jnp.dot(x2, w_ref[...], preferred_element_type=jnp.float32)          # (gb*n, out+2H)
    proj3 = proj.reshape(gb, n, out_dim + 2 * num_heads)                        # leading split
    h = proj3[:, :, :out_dim]                                                   # (gb, n, out)

    # ---- Unpack additive mask bias (gb, n*n) -> (gb, n_dst, n_src) ----
    eb3 = jnp.concatenate(
        [eb_ref[:, d * n:(d + 1) * n][:, None, :] for d in range(n)], axis=1)   # (gb, n, n)

    out_parts = []
    for hd in range(num_heads):
        h_hd = h[:, :, hd * hidden:(hd + 1) * hidden]                           # (gb, n, hidden)
        ss = proj3[:, :, out_dim + hd:out_dim + hd + 1]                         # (gb, n_src, 1)
        sd = proj3[:, :, out_dim + num_heads + hd:out_dim + num_heads + hd + 1] # (gb, n_dst, 1)

        # Broadcast src scores along the lane axis without any transpose:
        #   ss_b[g, d, s] = ss[g, s]   (K=1 batched outer product, flash-style einsum).
        ss_b = jnp.einsum("gdk,gsk->gds", jnp.ones_like(sd), ss,
                          preferred_element_type=jnp.float32)                   # (gb, n_d, n_s)

        # e[g, d, s] = LeakyReLU(a_dst.h[d] + a_src.h[s]) + mask_bias
        e = sd + ss_b
        e = jnp.where(e >= 0.0, e, 0.2 * e)
        e = e + eb3                                                             # masked -> ~-1e30

        # Softmax over incoming edges (src axis = lanes); self-loop keeps the max finite.
        e_max = jnp.max(e, axis=2, keepdims=True)                               # (gb, n_d, 1)
        p = jnp.exp(e - e_max)                                                  # masked -> 0.0
        denom = jnp.sum(p, axis=2, keepdims=True)                               # (gb, n_d, 1)
        alpha = p / denom                                                       # exact division

        # out[g, d, :] = sum_s alpha[g, d, s] * h[g, s, :]  (natural MXU contraction)
        out_parts.append(jnp.einsum("gds,gsh->gdh", alpha, h_hd,
                                    preferred_element_type=jnp.float32))        # (gb, n_d, hid)

    out3 = out_parts[0] if num_heads == 1 else jnp.concatenate(out_parts, axis=-1)

    # ---- Pack nodes into the lane axis -> single dense (gb, n*out) store ----
    packed = jnp.concatenate([out3[:, d, :] for d in range(n)], axis=-1)        # (gb, n*out)
    o_ref[...] = (packed + b_ref[...]).astype(o_ref.dtype)


def gat_layer_forward(x, adj, params, *, num_heads, hidden):
    """x: (B, S, N, F) float32; adj: (B, S, N, N). Returns (B, S, N, heads*hidden)."""
    B, S, N, F = x.shape
    G = B * S
    out_dim = num_heads * hidden
    W, a_src, a_dst, bias = params  # (F, H*hid), (H, hid), (H, hid), (1, H*hid)

    # Fused RHS: [W | W@a_src | W@a_dst]  (tiny, built once outside the kernel).
    Wr = W.reshape(F, num_heads, hidden)
    w_all = jnp.concatenate(
        [W,
         jnp.einsum("fkh,kh->fk", Wr, a_src),
         jnp.einsum("fkh,kh->fk", Wr, a_dst)], axis=1).astype(jnp.float32)      # (F, out+2H)

    # Lane-packed node features.
    x_packed = x.reshape(G, N * F).astype(jnp.float32)                          # (G, N*F)

    # Additive mask bias in [dst, src] orientation with self-loops folded in (host-side).
    conn = (jnp.swapaxes(adj.reshape(G, N, N), 1, 2) != 0) | jnp.eye(N, dtype=bool)
    eb = jnp.where(conn, 0.0, _MASK_NEG).astype(jnp.float32).reshape(G, N * N)  # (G, N*N)

    # Output bias tiled per node so it adds directly onto the packed (gb, N*out) slab.
    b_row = jnp.tile(bias.reshape(1, out_dim), (1, N)).astype(jnp.float32)      # (1, N*out)

    # Graph blocking: pad G up to a whole number of blocks, with at least 2 grid steps.
    Gb = _pick_graph_block(G)
    num_blocks = max(pl.cdiv(G, Gb), 2)
    G_pad = num_blocks * Gb
    if G_pad != G:
        pad = G_pad - G
        x_packed = jnp.pad(x_packed, ((0, pad), (0, 0)))
        eb = jnp.pad(eb, ((0, pad), (0, 0)))  # bias 0 == "all edges" -> padded rows stay finite

    kernel = functools.partial(_gat_kernel, n=N, f=F, hidden=hidden, num_heads=num_heads)
    out = pl.pallas_call(
        kernel,
        out_shape=jax.ShapeDtypeStruct((G_pad, N * out_dim), jnp.float32),
        grid=(num_blocks,),
        in_specs=[
            pl.BlockSpec((Gb, N * F), lambda g: (g, 0)),
            pl.BlockSpec((Gb, N * N), lambda g: (g, 0)),
            pl.BlockSpec((F, out_dim + 2 * num_heads), lambda g: (0, 0)),
            pl.BlockSpec((1, N * out_dim), lambda g: (0, 0)),
        ],
        out_specs=pl.BlockSpec((Gb, N * out_dim), lambda g: (g, 0)),
        compiler_params=pltpu.CompilerParams(
            dimension_semantics=("parallel",),
            vmem_limit_bytes=32 * 1024 * 1024),
    )(x_packed, eb, w_all, b_row)

    return out[:G].reshape(B, S, N, out_dim)


def gat_layer_reference(x, adj, params, *, num_heads, hidden):
    """Pure-JAX reference (mirrors PyG GATConv over dense_to_sparse(adj) per time step)."""
    W, a_src, a_dst, bias = params
    B, S, N, F = x.shape
    h = jnp.einsum("bsnf,fo->bsno", x, W).reshape(B, S, N, num_heads, hidden)
    ss = jnp.einsum("bsnkh,kh->bsnk", h, a_src)
    sd = jnp.einsum("bsnkh,kh->bsnk", h, a_dst)
    e = sd[:, :, :, None, :] + ss[:, :, None, :, :]          # (B,S,dst,src,heads)
    e = jnp.where(e >= 0.0, e, 0.2 * e)
    mask = (jnp.swapaxes(adj, -1, -2) != 0.0) | jnp.eye(N, dtype=bool)
    e = jnp.where(mask[..., None], e, -jnp.inf)
    alpha = jax.nn.softmax(e, axis=3)
    out = jnp.einsum("bsijk,bsjkh->bsikh", alpha, h)
    return out.reshape(B, S, N, num_heads * hidden) + bias[0]


if __name__ == "__main__":
    # Small shapes consistent with the module's forward.
    B, S, N, F = 2, 4, 8, 16          # batch, seq_len, num_nodes, in_features
    hidden = 32                       # hidden_features
    num_heads = 1                     # reference forward only works for heads == 1

    key = jax.random.PRNGKey(0)
    kx, kadj, kw, kas, kad, kb = jax.random.split(key, 6)

    x = jax.random.normal(kx, (B, S, N, F), dtype=jnp.float32)
    # Random binary adjacency (~40% density); values are only used as a nonzero mask.
    adj = (jax.random.uniform(kadj, (B, S, N, N)) < 0.4).astype(jnp.float32)

    # GATConv parameter shapes: lin (F, heads*H), att (heads, H), bias (heads*H,).
    W = jax.random.normal(kw, (F, num_heads * hidden), dtype=jnp.float32) * (1.0 / jnp.sqrt(F))
    a_src = jax.random.normal(kas, (num_heads, hidden), dtype=jnp.float32) * 0.1
    a_dst = jax.random.normal(kad, (num_heads, hidden), dtype=jnp.float32) * 0.1
    bias = jax.random.normal(kb, (1, num_heads * hidden), dtype=jnp.float32) * 0.01
    params = (W, a_src, a_dst, bias)

    out = gat_layer_forward(x, adj, params, num_heads=num_heads, hidden=hidden)
    out = jax.block_until_ready(out)

    ref = gat_layer_reference(x, adj, params, num_heads=num_heads, hidden=hidden)
    assert out.shape == (B, S, N, num_heads * hidden)
    # All in-kernel math is exact f32 (no approximate reciprocal) -> tight tolerance.
    assert jnp.allclose(out, ref, atol=1e-3, rtol=1e-3), "Pallas output mismatch vs JAX reference"

    print("KERNEL_OK")
</pallas_src>

<mosaic_0001>
module attributes {stable_mosaic.version = 11 : i64} {
  func.func @_gat_kernel(%arg0: i32, %arg1: memref<8x128xf32, #tpu.memory_space<vmem>>, %arg2: memref<8x64xf32, #tpu.memory_space<vmem>>, %arg3: memref<16x34xf32, #tpu.memory_space<vmem>>, %arg4: memref<1x256xf32, #tpu.memory_space<vmem>>, %arg5: memref<8x256xf32, #tpu.memory_space<vmem>>) attributes {dimension_semantics = [#tpu.dimension_semantics<parallel>], iteration_bounds = array<i64: 2>, scalar_prefetch = 0 : i64, scratch_operands = 0 : i64, tpu.core_type = #tpu.core_type<tc>, window_params = [{transform_indices = @transform_0, window_bounds = array<i64: 8, 128>}, {transform_indices = @transform_1, window_bounds = array<i64: 8, 64>}, {pipeline_mode = #tpu.pipeline_mode<synchronous>, transform_indices = @transform_2, window_bounds = array<i64: 16, 34>}, {pipeline_mode = #tpu.pipeline_mode<synchronous>, transform_indices = @transform_3, window_bounds = array<i64: 1, 256>}, {transform_indices = @transform_4, window_bounds = array<i64: 8, 256>}]} {
    %c0 = arith.constant 0 : index
    %c0_0 = arith.constant 0 : index
    %0 = vector.load %arg1[%c0, %c0_0] : memref<8x128xf32, #tpu.memory_space<vmem>>, vector<8x16xf32>
    %1 = vector.shape_cast %0 : vector<8x16xf32> to vector<8x1x16xf32>
    %c0_1 = arith.constant 0 : index
    %c16 = arith.constant 16 : index
    %2 = vector.load %arg1[%c0_1, %c16] : memref<8x128xf32, #tpu.memory_space<vmem>>, vector<8x16xf32>
    %3 = vector.shape_cast %2 : vector<8x16xf32> to vector<8x1x16xf32>
    %c0_2 = arith.constant 0 : index
    %c32 = arith.constant 32 : index
    %4 = vector.load %arg1[%c0_2, %c32] : memref<8x128xf32, #tpu.memory_space<vmem>>, vector<8x16xf32>
    %5 = vector.shape_cast %4 : vector<8x16xf32> to vector<8x1x16xf32>
    %c0_3 = arith.constant 0 : index
    %c48 = arith.constant 48 : index
    %6 = vector.load %arg1[%c0_3, %c48] : memref<8x128xf32, #tpu.memory_space<vmem>>, vector<8x16xf32>
    %7 = vector.shape_cast %6 : vector<8x16xf32> to vector<8x1x16xf32>
    %c0_4 = arith.constant 0 : index
    %c64 = arith.constant 64 : index
    %8 = vector.load %arg1[%c0_4, %c64] : memref<8x128xf32, #tpu.memory_space<vmem>>, vector<8x16xf32>
    %9 = vector.shape_cast %8 : vector<8x16xf32> to vector<8x1x16xf32>
    %c0_5 = arith.constant 0 : index
    %c80 = arith.constant 80 : index
    %10 = vector.load %arg1[%c0_5, %c80] : memref<8x128xf32, #tpu.memory_space<vmem>>, vector<8x16xf32>
    %11 = vector.shape_cast %10 : vector<8x16xf32> to vector<8x1x16xf32>
    %c0_6 = arith.constant 0 : index
    %c96 = arith.constant 96 : index
    %12 = vector.load %arg1[%c0_6, %c96] : memref<8x128xf32, #tpu.memory_space<vmem>>, vector<8x16xf32>
    %13 = vector.shape_cast %12 : vector<8x16xf32> to vector<8x1x16xf32>
    %c0_7 = arith.constant 0 : index
    %c112 = arith.constant 112 : index
    %14 = vector.load %arg1[%c0_7, %c112] : memref<8x128xf32, #tpu.memory_space<vmem>>, vector<8x16xf32>
    %15 = vector.shape_cast %14 : vector<8x16xf32> to vector<8x1x16xf32>
    %16 = tpu.concatenate %1, %3, %5, %7, %9, %11, %13, %15 in 1 : vector<8x1x16xf32>, vector<8x1x16xf32>, vector<8x1x16xf32>, vector<8x1x16xf32>, vector<8x1x16xf32>, vector<8x1x16xf32>, vector<8x1x16xf32>, vector<8x1x16xf32> -> vector<8x8x16xf32>
    %17 = vector.shape_cast %16 : vector<8x8x16xf32> to vector<64x16xf32>
    %c0_8 = arith.constant 0 : index
    %c0_9 = arith.constant 0 : index
    %18 = vector.load %arg3[%c0_8, %c0_9] : memref<16x34xf32, #tpu.memory_space<vmem>>, vector<16x34xf32>
    %cst = arith.constant dense<0.000000e+00> : vector<64x34xf32>
    %19 = tpu.matmul %17, %18, %cst {dimension_numbers = #tpu.dot_dimension_numbers<[1], [0], [0], [1], [0, 0, 1, 1], [], []>} : vector<64x16xf32>, vector<16x34xf32>, vector<64x34xf32> -> vector<64x34xf32>
    %20 = vector.shape_cast %19 : vector<64x34xf32> to vector<8x8x34xf32>
    %21 = vector.extract_strided_slice %20 {offsets = [0, 0, 0], sizes = [8, 8, 32], strides = [1, 1, 1]} : vector<8x8x34xf32> to vector<8x8x32xf32>
    %c0_10 = arith.constant 0 : index
    %c0_11 = arith.constant 0 : index
    %22 = vector.load %arg2[%c0_10, %c0_11] : memref<8x64xf32, #tpu.memory_space<vmem>>, vector<8x8xf32>
    %23 = vector.shape_cast %22 : vector<8x8xf32> to vector<8x1x8xf32>
    %c0_12 = arith.constant 0 : index
    %c8 = arith.constant 8 : index
    %24 = vector.load %arg2[%c0_12, %c8] : memref<8x64xf32, #tpu.memory_space<vmem>>, vector<8x8xf32>
    %25 = vector.shape_cast %24 : vector<8x8xf32> to vector<8x1x8xf32>
    %c0_13 = arith.constant 0 : index
    %c16_14 = arith.constant 16 : index
    %26 = vector.load %arg2[%c0_13, %c16_14] : memref<8x64xf32, #tpu.memory_space<vmem>>, vector<8x8xf32>
    %27 = vector.shape_cast %26 : vector<8x8xf32> to vector<8x1x8xf32>
    %c0_15 = arith.constant 0 : index
    %c24 = arith.constant 24 : index
    %28 = vector.load %arg2[%c0_15, %c24] : memref<8x64xf32, #tpu.memory_space<vmem>>, vector<8x8xf32>
    %29 = vector.shape_cast %28 : vector<8x8xf32> to vector<8x1x8xf32>
    %c0_16 = arith.constant 0 : index
    %c32_17 = arith.constant 32 : index
    %30 = vector.load %arg2[%c0_16, %c32_17] : memref<8x64xf32, #tpu.memory_space<vmem>>, vector<8x8xf32>
    %31 = vector.shape_cast %30 : vector<8x8xf32> to vector<8x1x8xf32>
    %c0_18 = arith.constant 0 : index
    %c40 = arith.constant 40 : index
    %32 = vector.load %arg2[%c0_18, %c40] : memref<8x64xf32, #tpu.memory_space<vmem>>, vector<8x8xf32>
    %33 = vector.shape_cast %32 : vector<8x8xf32> to vector<8x1x8xf32>
    %c0_19 = arith.constant 0 : index
    %c48_20 = arith.constant 48 : index
    %34 = vector.load %arg2[%c0_19, %c48_20] : memref<8x64xf32, #tpu.memory_space<vmem>>, vector<8x8xf32>
    %35 = vector.shape_cast %34 : vector<8x8xf32> to vector<8x1x8xf32>
    %c0_21 = arith.constant 0 : index
    %c56 = arith.constant 56 : index
    %36 = vector.load %arg2[%c0_21, %c56] : memref<8x64xf32, #tpu.memory_space<vmem>>, vector<8x8xf32>
    %37 = vector.shape_cast %36 : vector<8x8xf32> to vector<8x1x8xf32>
    %38 = tpu.concatenate %23, %25, %27, %29, %31, %33, %35, %37 in 1 : vector<8x1x8xf32>, vector<8x1x8xf32>, vector<8x1x8xf32>, vector<8x1x8xf32>, vector<8x1x8xf32>, vector<8x1x8xf32>, vector<8x1x8xf32>, vector<8x1x8xf32> -> vector<8x8x8xf32>
    %39 = vector.extract_strided_slice %20 {offsets = [0, 0, 32], sizes = [8, 8, 1], strides = [1, 1, 1]} : vector<8x8x34xf32> to vector<8x8x1xf32>
    %40 = vector.extract_strided_slice %20 {offsets = [0, 0, 33], sizes = [8, 8, 1], strides = [1, 1, 1]} : vector<8x8x34xf32> to vector<8x8x1xf32>
    %cst_22 = arith.constant 1.000000e+00 : f32
    %41 = vector.broadcast %cst_22 : f32 to vector<8x8x1xf32>
    "tpu.trace_start"() <{level = 10 : i32, message = "gdk,gsk->gds"}> : () -> ()
    %cst_23 = arith.constant dense<0.000000e+00> : vector<8x8x8xf32>
    %42 = tpu.matmul %41, %39, %cst_23 {dimension_numbers = #tpu.dot_dimension_numbers<[2], [2], [1], [1], [0, 0, 0, 1, 1, 1], [0], [0]>} : vector<8x8x1xf32>, vector<8x8x1xf32>, vector<8x8x8xf32> -> vector<8x8x8xf32>
    "tpu.trace_stop"() : () -> ()
    %43 = vector.broadcast %40 : vector<8x8x1xf32> to vector<8x8x8xf32>
    %44 = arith.addf %43, %42 : vector<8x8x8xf32>
    %cst_24 = arith.constant 0.000000e+00 : f32
    %45 = vector.broadcast %cst_24 : f32 to vector<8x8x8xf32>
    %46 = arith.cmpf oge, %44, %45 : vector<8x8x8xf32>
    %cst_25 = arith.constant 2.000000e-01 : f32
    %47 = vector.broadcast %cst_25 : f32 to vector<8x8x8xf32>
    %48 = arith.mulf %47, %44 : vector<8x8x8xf32>
    %49 = arith.select %46, %44, %48 : vector<8x8x8xi1>, vector<8x8x8xf32>
    %50 = arith.addf %49, %38 : vector<8x8x8xf32>
    %cst_26 = arith.constant dense<0xFF800000> : vector<8x8xf32>
    %51 = vector.multi_reduction <maximumf>, %50, %cst_26 [2] : vector<8x8x8xf32> to vector<8x8xf32>
    %52 = vector.shape_cast %51 : vector<8x8xf32> to vector<8x8x1xf32>
    %53 = vector.broadcast %52 : vector<8x8x1xf32> to vector<8x8x8xf32>
    %54 = arith.subf %50, %53 : vector<8x8x8xf32>
    %55 = math.exp %54 : vector<8x8x8xf32>
    %cst_27 = arith.constant dense<0.000000e+00> : vector<8x8xf32>
    %56 = vector.multi_reduction <add>, %55, %cst_27 [2] : vector<8x8x8xf32> to vector<8x8xf32>
    %57 = vector.shape_cast %56 : vector<8x8xf32> to vector<8x8x1xf32>
    %58 = vector.broadcast %57 : vector<8x8x1xf32> to vector<8x8x8xf32>
    %59 = arith.divf %55, %58 : vector<8x8x8xf32>
    "tpu.trace_start"() <{level = 10 : i32, message = "gds,gsh->gdh"}> : () -> ()
    %cst_28 = arith.constant dense<0.000000e+00> : vector<8x8x32xf32>
    %60 = tpu.matmul %59, %21, %cst_28 {dimension_numbers = #tpu.dot_dimension_numbers<[2], [1], [1], [2], [0, 0, 0, 1, 1, 2], [0], [0]>} : vector<8x8x8xf32>, vector<8x8x32xf32>, vector<8x8x32xf32> -> vector<8x8x32xf32>
    "tpu.trace_stop"() : () -> ()
    %61 = vector.extract_strided_slice %60 {offsets = [0, 0, 0], sizes = [8, 1, 32], strides = [1, 1, 1]} : vector<8x8x32xf32> to vector<8x1x32xf32>
    %62 = vector.shape_cast %61 : vector<8x1x32xf32> to vector<8x32xf32>
    %63 = vector.extract_strided_slice %60 {offsets = [0, 1, 0], sizes = [8, 1, 32], strides = [1, 1, 1]} : vector<8x8x32xf32> to vector<8x1x32xf32>
    %64 = vector.shape_cast %63 : vector<8x1x32xf32> to vector<8x32xf32>
    %65 = vector.extract_strided_slice %60 {offsets = [0, 2, 0], sizes = [8, 1, 32], strides = [1, 1, 1]} : vector<8x8x32xf32> to vector<8x1x32xf32>
    %66 = vector.shape_cast %65 : vector<8x1x32xf32> to vector<8x32xf32>
    %67 = vector.extract_strided_slice %60 {offsets = [0, 3, 0], sizes = [8, 1, 32], strides = [1, 1, 1]} : vector<8x8x32xf32> to vector<8x1x32xf32>
    %68 = vector.shape_cast %67 : vector<8x1x32xf32> to vector<8x32xf32>
    %69 = vector.extract_strided_slice %60 {offsets = [0, 4, 0], sizes = [8, 1, 32], strides = [1, 1, 1]} : vector<8x8x32xf32> to vector<8x1x32xf32>
    %70 = vector.shape_cast %69 : vector<8x1x32xf32> to vector<8x32xf32>
    %71 = vector.extract_strided_slice %60 {offsets = [0, 5, 0], sizes = [8, 1, 32], strides = [1, 1, 1]} : vector<8x8x32xf32> to vector<8x1x32xf32>
    %72 = vector.shape_cast %71 : vector<8x1x32xf32> to vector<8x32xf32>
    %73 = vector.extract_strided_slice %60 {offsets = [0, 6, 0], sizes = [8, 1, 32], strides = [1, 1, 1]} : vector<8x8x32xf32> to vector<8x1x32xf32>
    %74 = vector.shape_cast %73 : vector<8x1x32xf32> to vector<8x32xf32>
    %75 = vector.extract_strided_slice %60 {offsets = [0, 7, 0], sizes = [8, 1, 32], strides = [1, 1, 1]} : vector<8x8x32xf32> to vector<8x1x32xf32>
    %76 = vector.shape_cast %75 : vector<8x1x32xf32> to vector<8x32xf32>
    %77 = tpu.concatenate %62, %64, %66, %68, %70, %72, %74, %76 in 1 : vector<8x32xf32>, vector<8x32xf32>, vector<8x32xf32>, vector<8x32xf32>, vector<8x32xf32>, vector<8x32xf32>, vector<8x32xf32>, vector<8x32xf32> -> vector<8x256xf32>
    %c0_29 = arith.constant 0 : index
    %c0_30 = arith.constant 0 : index
    %78 = vector.load %arg4[%c0_29, %c0_30] : memref<1x256xf32, #tpu.memory_space<vmem>>, vector<1x256xf32>
    %79 = vector.broadcast %78 : vector<1x256xf32> to vector<8x256xf32>
    %80 = arith.addf %77, %79 : vector<8x256xf32>
    %c0_31 = arith.constant 0 : index
    %c0_32 = arith.constant 0 : index
    %81 = vector.load %arg5[%c0_31, %c0_32] : memref<8x256xf32, #tpu.memory_space<vmem>>, vector<8x256xf32>
    tpu.vector_store %arg5[%c0_31, %c0_32], %80 {strides = array<i32>} : memref<8x256xf32, #tpu.memory_space<vmem>>, vector<8x256xf32>,
    return
  }
  func.func @transform_0(%arg0: i32) -> (i32, i32) {
    %c0_i32 = arith.constant 0 : i32
    %c0_i32_0 = arith.constant 0 : i32
    return %arg0, %c0_i32 : i32, i32
  }
  func.func @transform_1(%arg0: i32) -> (i32, i32) {
    %c0_i32 = arith.constant 0 : i32
    %c0_i32_0 = arith.constant 0 : i32
    return %arg0, %c0_i32 : i32, i32
  }
  func.func @transform_2(%arg0: i32) -> (i32, i32) {
    %c0_i32 = arith.constant 0 : i32
    %c0_i32_0 = arith.constant 0 : i32
    %c0_i32_1 = arith.constant 0 : i32
    return %c0_i32, %c0_i32_0 : i32, i32
  }
  func.func @transform_3(%arg0: i32) -> (i32, i32) {
    %c0_i32 = arith.constant 0 : i32
    %c0_i32_0 = arith.constant 0 : i32
    %c0_i32_1 = arith.constant 0 : i32
    return %c0_i32, %c0_i32_0 : i32, i32
  }
  func.func @transform_4(%arg0: i32) -> (i32, i32) {
    %c0_i32 = arith.constant 0 : i32
    %c0_i32_0 = arith.constant 0 : i32
    return %arg0, %c0_i32 : i32, i32
  }
}

</mosaic_0001>

<bundles_post_ra>
// kernel: tpu_custom_call.1
= control target key start
LH: loop header
LB: loop body
LE: loop exit
PB: predicated region body
PF: predicated region fallthrough
CT: control target
= control target key end

     0   :  { %s4034_s0 = inlined_call_operand.hbm [shape: f32[16,128], index: 0, kind: input, shape index: {}]   ;;  %s4035_s1 = inlined_call_operand.hbm [shape: f32[16,64], index: 1, kind: input, shape index: {}]   ;;  %s4036_s2 = inlined_call_operand.hbm [shape: f32[16,34], index: 2, kind: input, shape index: {}]   ;;  %s4037_s3 = inlined_call_operand.vmem [shape: f32[1,256], index: 3, kind: input, shape index: {}]   ;;  %s4038_s4 = inlined_call_operand.hbm [shape: f32[16,256], index: 4, kind: output, shape index: {}]  }
   0x1   :  { %4043 = sst [smem:[#allocation13_spill]] %s4036_s2 }
   0x2   :  { %9 = vsyncpa [#allocation3], 0 }
   0x3   :  { %11 = vsyncpa [#allocation3 + $0x1], 0 }
   0x4   :  { %12 = vsyncpa [#allocation6], 0 }
   0x5   :  { %14 = vsyncpa [#allocation6 + $0x1], 0 }
   0x6   :  { %15 = vsyncpa [#allocation4], 0 }
   0x7   :  { %17 = vsyncpa [#allocation4 + $0x1], 0  ;;  %s3179_s15 = smov 0   ;;  %s3181_s16 = smov 0  }
   0x8   :  { %s3183_s17 = smov 0   ;;  %s3185_s18 = smov 0  }
   0x9 LB: > { %s3200_s19 = sadd.s32 4294967295, %s3130_s18   ;;  %s2671_s20 = sadd.s32 4294967294, %s3130_s18   ;;  %s3130_s18 = sphi %s3185_s18, %s4062_s18   ;;  %s3126_s17 = sphi %s3183_s17, %s4061_s17   ;;  %s3122_s16 = sphi %s3181_s16, %s4060_s16   ;;  %s3118_s15 = sphi %s3179_s15, %s4059_s15  }
   0xa   : > { %p43_p0 = scmp.ne.s32.totalorder %s3122_s16, %s3118_s15  ;;  %p4039_p1 = scmp.eq.s32.totalorder %s3200_s19, 0 }
   0xb   : > { %p141_p3 = scmp.eq.s32.totalorder %s2671_s20, 1  ;;  %p2672_p5 = scmp.ge.s32.totalorder %s3130_s18, 1 }
   0xc   : > { %p3209_p4 = por %p4039_p1, %p43_p0  ;;  %p148_p7 = scmp.lt.s32.totalorder %s3130_s18, 3 }
   0xd   : > { %p3214_p6 = por %p141_p3, %p43_p0  ;;  %s3132_s24 = smov [#allocation7]  }
   0xe   : > { %s4044_s21 = scalar_select %p3209_p4, 1, 0 }
   0xf   : > { %s4045_s22 = scalar_select %p3214_p6, 1, 0 }
  0x10   : > { %p3219_p8 = pnand %p2672_p5, %p148_p7  ;;  %s160_s25 = sshll.u32 %s3132_s24, 4  ;;  %s161_s25 = int_to_ptr.vmem [resolvable:$true] %s160_s25 }
  0x11   : > { %s3233_s27 = sadd.s32 1, %s3130_s18   ;;  %s30_s28 = sadd.s32 1, %s3126_s17 }
  0x12   : > { %s4046_s23 = scalar_select %p3219_p8, 1, 0 }
  0x13   : > { %p2870_p9 = pneg %p3219_p8  ;;  %s27_s29 = ssub.s32 %s3130_s18, %s3233_s27 }
  0x14   : > { %s2987_s30 = scalar_lea.vmem %s161_s25, 256  ;;  %p2995_p5 = scmp.lt.s32.totalorder %s161_s25, %s161_s25 }
  0x15   : > { %p3228_p11 = pnand %p2870_p9, %p4039_p1  ;;  %p2988_p13 = scmp.ne.s32.totalorder %s161_s25, %s2987_s30 }
  0x16   : > { %p2996_p7 = scmp.lt.s32.totalorder %s2987_s30, %s2987_s30 }
  0x17   : > { %p2978_p12 = pneg %p3228_p11 }
  0x18   : > { %p2997_p10 = por %p2996_p7, %p2995_p5 }
  0x19   : > { %p2990_p0 = pnand %p2988_p13, %p2978_p12 }
  0x1b   : > { %p2991_p3 = pneg %p2990_p0 }
  0x1d   : > { %p2998_p2 = pnand %p2997_p10, %p2991_p3 }
  0x1f   : > { %3001 = shalt.err (!%p2998_p2)
}
  0x20   : > { %s3133_s5 = smov 128   ;;  %s3134_s6 = smov 8  }
  0x21   : > { %s4048_s2 = sld [smem:[#allocation13_spill]]  ;;  %p28_p9 = scmp.eq.s32.totalorder %s27_s29, 0 }
  0x22   : > { %p37_p12 = scmp.ne.s32.totalorder %s3126_s17, %s3122_s16  ;;  %p38_p10 = scmp.eq.s32.totalorder %s3130_s18, 0 }
  0x23   : > { %p2886_p2 = scmp.lt.s32.totalorder %s3130_s18, 2  ;;  %p4049_p0 = scmp.eq.s32.totalorder %s3200_s19, 1 }
  0x24   : > { %s3250_s9 = scalar_select %p28_p9, %s3126_s17, %s30_s28  }
  0x25   : > { %p39_p13 = por %p38_p10, %p37_p12  ;;  %p3254_p3 = por %p4049_p0, %p37_p12 }
  0x26   : > { %s177_s11 = sand.u32 1, %s3126_s17   ;;  %s2676_s12 = sshll.u32 %s3130_s18, 7 }
  0x27   : > { %2873 = dma.hbm_to_vmem [thread:$0]  (!%p3228_p11), %s4048_s2, 256, %s161_s25, [#allocation6], %s3133_s5, %s3133_s5, %s3134_s6  }
  0x28   : > { %s4050_s10 = scalar_select %p3254_p3, 1, 0 }
  0x29   : > { %s3260_s13 = sshll.u32 %s177_s11, 3  ;;  %s3265_s24 = scalar_lea.hbm %s4034_s0, %s2676_s12 }
  0x2a   : > { %s181_s25 = scalar_lea.vmem [#allocation2], %s3260_s13  ;;  %p3268_p11 = pnand %p2886_p2, %p39_p13 }
  0x2b   : > { %s188_s26 = sshll.u32 %s181_s25, 4  ;;  %s3275_s5 = scalar_lea.hbm %s4035_s1, %s2676_s12  ;;  %s189_s26 = int_to_ptr.vmem [resolvable:$true] %s188_s26 }
  0x2c   : > { %s178_s6 = scalar_lea.sflag [#allocation3], %s177_s11  ;;  %s3002_s7 = scalar_lea.hbm %s3265_s24, 128 }
  0x2d   : > { %p3003_p5 = scmp.ne.s32.totalorder %s3265_s24, %s3002_s7  ;;  %p3004_p7 = pneg %p3268_p11 }
  0x2e   : > { %s3007_s20 = scalar_lea.hbm %s4034_s0, 256  ;;  %p3008_p10 = scmp.lt.s32.totalorder %s3265_s24, %s4034_s0 }
  0x2f   : > { %p3005_p9 = pnand %p3004_p7, %p3003_p5  ;;  %p3009_p2 = scmp.lt.s32.totalorder %s3007_s20, %s3002_s7 }
  0x31   : > { %p3006_p12 = pneg %p3005_p9  ;;  %p3010_p13 = por %p3009_p2, %p3008_p10 }
  0x33   : > { %p3011_p0 = pnand %p3010_p13, %p3006_p12 }
  0x35   : > { %3014 = shalt.err (!%p3011_p0)
}
  0x36   : > { %s3015_s11 = scalar_lea.vmem %s189_s26, 128  ;;  %s3135_s12 = smov [#allocation2]  }
  0x37   : > { %p3016_p1 = scmp.ne.s32.totalorder %s189_s26, %s3015_s11  ;;  %s3020_s29 = sshll.u32 %s3135_s12, 4  ;;  %s3021_s29 = int_to_ptr.vmem [resolvable:$false] %s3020_s29 }
  0x38   : > { %s3022_s30 = scalar_lea.vmem %s3021_s29, 256  ;;  %p3023_p9 = scmp.lt.s32.totalorder %s189_s26, %s3021_s29 }
  0x39   : > { %p3018_p6 = pnand %p3016_p1, %p3004_p7  ;;  %p3024_p3 = scmp.lt.s32.totalorder %s3022_s30, %s3015_s11 }
  0x3b   : > { %p3019_p5 = pneg %p3018_p6  ;;  %p3025_p4 = por %p3024_p3, %p3023_p9 }
  0x3d   : > { %p3026_p8 = pnand %p3025_p4, %p3019_p5 }
  0x3f   : > { %3029 = shalt.err (!%p3026_p8)
}
  0x40   : > { %2877 = dma.hbm_to_vmem [thread:$0]  (!%p3268_p11), %s3265_s24, 128, %s189_s26, %s178_s6  }
  0x41   : > { %s195_s2 = sand.u32 1, %s3130_s18   ;;  %s199_s7 = scalar_lea.vmem [#allocation5], %s3260_s13 }
  0x42   : > { %s206_s8 = sshll.u32 %s199_s7, 4  ;;  %s196_s14 = scalar_lea.sflag [#allocation6], %s195_s2  ;;  %s207_s8 = int_to_ptr.vmem [resolvable:$true] %s206_s8 }
  0x43   : > { %s3030_s20 = scalar_lea.hbm %s3275_s5, 128  ;;  %s3035_s12 = scalar_lea.hbm %s4035_s1, 256 }
  0x44   : > { %p3031_p1 = scmp.ne.s32.totalorder %s3275_s5, %s3030_s20  ;;  %p3036_p8 = scmp.lt.s32.totalorder %s3275_s5, %s4035_s1 }
  0x45   : > { %p3037_p3 = scmp.lt.s32.totalorder %s3035_s12, %s3030_s20 }
  0x46   : > { %p3033_p4 = pnand %p3031_p1, %p3004_p7 }
  0x47   : > { %p3038_p12 = por %p3037_p3, %p3036_p8 }
  0x48   : > { %p3034_p6 = pneg %p3033_p4 }
  0x4a   : > { %p3039_p10 = pnand %p3038_p12, %p3034_p6 }
  0x4c   : > { %3042 = shalt.err (!%p3039_p10)
}
  0x4d   : > { %s3043_s13 = scalar_lea.vmem %s207_s8, 128  ;;  %s3136_s24 = smov [#allocation5]  }
  0x4e   : > { %p3044_p2 = scmp.ne.s32.totalorder %s207_s8, %s3043_s13  ;;  %s3048_s26 = sshll.u32 %s3136_s24, 4  ;;  %s3049_s26 = int_to_ptr.vmem [resolvable:$false] %s3048_s26 }
  0x4f   : > { %s3050_s6 = scalar_lea.vmem %s3049_s26, 256  ;;  %p3051_p5 = scmp.lt.s32.totalorder %s207_s8, %s3049_s26 }
  0x50   : > { %p3046_p13 = pnand %p3044_p2, %p3004_p7  ;;  %p3052_p9 = scmp.lt.s32.totalorder %s3050_s6, %s3043_s13 }
  0x52   : > { %p3047_p0 = pneg %p3046_p13  ;;  %p3053_p1 = por %p3052_p9, %p3051_p5 }
  0x54   : > { %p3054_p4 = pnand %p3053_p1, %p3047_p0 }
  0x56   : > { %3057 = shalt.err (!%p3054_p4)
}
  0x57   : > { %2880 = dma.hbm_to_vmem [thread:$0]  (!%p3268_p11), %s3275_s5, 128, %s207_s8, %s196_s14  }
  0x58   : > { %p4052_p6 = scmp.ne.s32.totalorder %s4046_s23, 0 }
  0x59   : > { %s3320_s2 = sand.u32 (!%p4052_p6), 1, %s3122_s16   ;;  %p4053_p7 = scmp.ne.s32.totalorder (!%p4052_p6), %s4044_s21, 0 }
  0x5a   : > { %215 = sbr.rel (%p4052_p6) target bundleno = 1501 (0x5dd), region = 36  ;;  %s2680_s7 = sshll.u32 (!%p4052_p6), %s3320_s2, 3 }
  0x5b   : > { %s218_s20 = scalar_lea.sflag (!%p4052_p6), [#allocation3], %s3320_s2  ;;  %s221_s25 = scalar_lea.vmem (!%p4052_p6), [#allocation2], %s2680_s7 }
  0x5f   : > { %3101 = dma.done.wait (%p4053_p7), %s218_s20, 128  }
  0x60   : > { %3103 = vsyncadd (%p4053_p7), %s218_s20, 4294967168  ;;  %s226_s28 = sand.u32 1, %s3200_s19   ;;  %s3329_s23 = scalar_lea.vmem [#allocation5], %s2680_s7 }
  0x61   : > { %s227_s5 = scalar_lea.sflag [#allocation6], %s226_s28 }
  0x62   : > { %3105 = dma.done.wait (%p4053_p7), %s227_s5, 128  }
  0x63   : > { %3107 = vsyncadd (%p4053_p7), %s227_s5, 4294967168  ;;  %p4054_p11 = scmp.eq.s32.totalorder %s3200_s19, 0 }
  0x65   : > { %3109 = dma.done.wait (%p4054_p11), [#allocation6], 256   ;;  %p4055_p8 = pmov %p4054_p11 }
  0x66   : > { %v270_v0 = vlaneseq  ;;  %v3137_v1 = vmov 1966171168   ;;  %v264_v6 = vld [vmem:[%s221_s25] sm:$0xff]  ;;  %s3138_s21 = smov 96   ;;  %s3139_s8 = smov 112   ;;  %vm523_vm0 = vcmask 1040384  }
  0x67   : > { %3111 = vsyncadd (%p4055_p8), [#allocation6], 4294967040  ;;  %v268_v2 = vunpack.c.l.s4 %v3137_v1  ;;  %s3140_s14 = smov 80   ;;  %s3141_s11 = smov 64   ;;  %v587_v14 = vld [vmem:[#allocation7 + $0x8] sm:$0xff]  ;;  %v586_v15 = vld [vmem:[#allocation7] sm:$0xff]  ;;  %v266_v20 = vcombine.high %v264_v6, %v264_v6 }
  0x68   : > { %v3339_v3 = vshrl.u32 %v270_v0, 7  ;;  %2764 = vmatprep.subr.mxu0 %v587_v14  ;;  %s3142_s12 = smov 48   ;;  %s3143_s29 = smov 32   ;;  %vm532_vm1 = vcmask 1041408   ;;  %vm541_vm2 = vcmask 1042432   ;;  %vm550_vm3 = vcmask 1043456  }
  0x69   : > { %v269_v4 = vunpack.c.0.s8 %v268_v2  ;;  %2765 = vmatpush3.msra.mxu0 %v587_v14  ;;  %s3144_s30 = smov 16   ;;  %vm559_vm4 = vcmask 1044480   ;;  %vm568_vm5 = vcmask 1045504   ;;  %vm577_vm6 = vcmask 1046528   ;;  %s3148_s13 = smov 120  }
  0x6a   : > { %v3346_v8 = vsub.s32 0, %v3339_v3  ;;  %2766 = vmatprep.subr.mxu0 %v586_v15  ;;  %vm588_vm7 = vcmask 130048   ;;  %vm3147_vm8 = vmmov 0   ;;  %s3149_s24 = smov 104   ;;  %s3150_s26 = smov 88   ;;  %vm1036_vm9 = vcmask 7168  }
  0x6b   : > { %v3342_v5 = vsub.s32 %v269_v4, %v3339_v3  ;;  %2767 = vmatpush3.msra.mxu0 %v586_v15  ;;  %s3152_s6 = smov 72   ;;  %vm1709_vm11 = vcmask 64512   ;;  %s2683_s7 = sshll.u32 %s3320_s2, 4 }
  0x6c   : > { %s2721_s28 = sshll.u32 %s3200_s19, 8  ;;  %s263_s5 = scalar_lea.vmem [#allocation8], %s2683_s7 }
  0x6d   : > { %v273_v7 = vrot.slane %v264_v6, %v3342_v5  ;;  %v280_v21 = vrot.slane %v266_v20, %v3342_v5  ;;  %s2555_s19 = scalar_lea.sflag [#allocation4], %s3320_s2  ;;  %p4056_p12 = scmp.ne.s32.totalorder %s4050_s10, 0 }
  0x6f   : > { %v3349_v9 = vrot.slane %v273_v7, %v3342_v5  ;;  %v281_v10 = vcombine.high %v273_v7, %v273_v7  ;;  %v3396_v22 = vrot.slane %v280_v21, %v3342_v5  ;;  %v282_v23 = vcombine.high %v280_v21, %v280_v21 }
  0x71   : > { %v326_v11 = vrot.slane %v3349_v9, %v3346_v8  ;;  %v3354_v12 = vrot.slane %v281_v10, %v3342_v5  ;;  %v3372_v16 = vcombine.high %v3349_v9, %v3349_v9  ;;  %v342_v24 = vrot.slane %v3396_v22, %v3346_v8 }
  0x72   : > { %v3403_v25 = vrot.slane %v282_v23, %v3342_v5  ;;  %v3415_v27 = vcombine.high %v3396_v22, %v3396_v22 }
  0x73   : > { %379 = vrot.lane.b32.xlu1 %v326_v11, %s3138_s21  ;;  %355 = vrot.lane.b32.xlu0 %v326_v11, %s3139_s8  ;;  %v330_v13 = vrot.slane %v3354_v12, %v3346_v8  ;;  %v3376_v17 = vcombine.high %v3354_v12, %v3354_v12  ;;  %v334_v18 = vrot.slane %v3372_v16, %v3346_v8 }
  0x74   : > { %v346_v26 = vrot.slane %v3403_v25, %v3346_v8  ;;  %v350_v28 = vrot.slane %v3415_v27, %v3346_v8  ;;  %v3425_v29 = vcombine.high %v3403_v25, %v3403_v25 }
  0x75   : > { %v338_v19 = vrot.slane %v3376_v17, %v3346_v8 }
  0x76   : > { %v354_v30 = vrot.slane %v3425_v29, %v3346_v8 }
  0x77   : > { %403 = vrot.lane.b32.xlu0 %v326_v11, %s3140_s14  ;;  %381 = vrot.lane.b32.xlu1 %v330_v13, %s3138_s21 }
  0x7b   : > { %427 = vrot.lane.b32.xlu0 %v326_v11, %s3141_s11  ;;  %405 = vrot.lane.b32.xlu1 %v330_v13, %s3140_s14 }
  0x7f   : > { %451 = vrot.lane.b32.xlu0 %v326_v11, %s3142_s12  ;;  %429 = vrot.lane.b32.xlu1 %v330_v13, %s3141_s11 }
  0x83   : > { %453 = vrot.lane.b32.xlu1 %v330_v13, %s3142_s12  ;;  %357 = vrot.lane.b32.xlu0 %v330_v13, %s3139_s8 }
  0x87   : > { %477 = vrot.lane.b32.xlu1 %v330_v13, %s3143_s29  ;;  %475 = vrot.lane.b32.xlu0 %v326_v11, %s3143_s29 }
  0x8b   : > { %501 = vrot.lane.b32.xlu1 %v330_v13, %s3144_s30  ;;  %499 = vrot.lane.b32.xlu0 %v326_v11, %s3144_s30 }
  0x8f   : > { %359 = vrot.lane.b32.xlu0 %v334_v18, %s3139_s8  ;;  %361 = vrot.lane.b32.xlu1 %v338_v19, %s3139_s8 }
  0x93   : > { %383 = vrot.lane.b32.xlu0 %v334_v18, %s3138_s21  ;;  %385 = vrot.lane.b32.xlu1 %v338_v19, %s3138_s21 }
  0x97   : > { %407 = vrot.lane.b32.xlu0 %v334_v18, %s3140_s14  ;;  %409 = vrot.lane.b32.xlu1 %v338_v19, %s3140_s14 }
  0x9b   : > { %431 = vrot.lane.b32.xlu0 %v334_v18, %s3141_s11  ;;  %433 = vrot.lane.b32.xlu1 %v338_v19, %s3141_s11 }
  0x9f   : > { %455 = vrot.lane.b32.xlu0 %v334_v18, %s3142_s12  ;;  %457 = vrot.lane.b32.xlu1 %v338_v19, %s3142_s12 }
  0xa3   : > { %479 = vrot.lane.b32.xlu0 %v334_v18, %s3143_s29  ;;  %481 = vrot.lane.b32.xlu1 %v338_v19, %s3143_s29 }
  0xa7   : > { %503 = vrot.lane.b32.xlu0 %v334_v18, %s3144_s30  ;;  %363 = vrot.lane.b32.xlu1 %v342_v24, %s3139_s8 }
  0xab   : > { %505 = vrot.lane.b32.xlu0 %v338_v19, %s3144_s30  ;;  %365 = vrot.lane.b32.xlu1 %v346_v26, %s3139_s8 }
  0xaf   : > { %387 = vrot.lane.b32.xlu0 %v342_v24, %s3138_s21  ;;  %389 = vrot.lane.b32.xlu1 %v346_v26, %s3138_s21 }
  0xb3   : > { %411 = vrot.lane.b32.xlu0 %v342_v24, %s3140_s14  ;;  %413 = vrot.lane.b32.xlu1 %v346_v26, %s3140_s14 }
  0xb7   : > { %435 = vrot.lane.b32.xlu0 %v342_v24, %s3141_s11  ;;  %367 = vrot.lane.b32.xlu1 %v350_v28, %s3139_s8 }
  0xbb   : > { %437 = vrot.lane.b32.xlu0 %v346_v26, %s3141_s11  ;;  %459 = vrot.lane.b32.xlu1 %v342_v24, %s3142_s12 }
  0xbf   : > { %391 = vrot.lane.b32.xlu1 %v350_v28, %s3138_s21  ;;  %369 = vrot.lane.b32.xlu0 %v354_v30, %s3139_s8 }
  0xc3   : > { %483 = vrot.lane.b32.xlu1 %v342_v24, %s3143_s29  ;;  %461 = vrot.lane.b32.xlu0 %v346_v26, %s3142_s12 }
  0xc7   : > { %415 = vrot.lane.b32.xlu1 %v350_v28, %s3140_s14  ;;  %393 = vrot.lane.b32.xlu0 %v354_v30, %s3138_s21 }
  0xcb   : > { %507 = vrot.lane.b32.xlu1 %v342_v24, %s3144_s30  ;;  %485 = vrot.lane.b32.xlu0 %v346_v26, %s3143_s29 }
  0xcf   : > { %439 = vrot.lane.b32.xlu1 %v350_v28, %s3141_s11  ;;  %417 = vrot.lane.b32.xlu0 %v354_v30, %s3140_s14 }
  0xd3   : > { %441 = vrot.lane.b32.xlu1 %v354_v30, %s3141_s11  ;;  %509 = vrot.lane.b32.xlu0 %v346_v26, %s3144_s30 }
  0xd7   : > { %465 = vrot.lane.b32.xlu1 %v354_v30, %s3142_s12  ;;  %463 = vrot.lane.b32.xlu0 %v350_v28, %s3142_s12  ;;  %s3153_s12 = smov [#allocation8]  }
  0xdb   : > { %489 = vrot.lane.b32.xlu1 %v354_v30, %s3143_s29  ;;  %487 = vrot.lane.b32.xlu0 %v350_v28, %s3143_s29 }
  0xdf   : > { %513 = vrot.lane.b32.xlu1 %v354_v30, %s3144_s30  ;;  %511 = vrot.lane.b32.xlu0 %v350_v28, %s3144_s30 }
  0xe5   : > { %v380_v31 = vpop.permute.xlu1 %379  ;;  %v356_v32 = vpop.permute.xlu0 %355 }
  0xe6   : > { %v524_v41 = vsel %vm523_vm0, %v3349_v9, %v356_v32 }
  0xe7   : > { %v533_v45 = vsel %vm532_vm1, %v524_v41, %v380_v31 }
  0xe9   : > { %v404_v33 = vpop.permute.xlu0 %403  ;;  %v382_v34 = vpop.permute.xlu1 %381 }
  0xea   : > { %v542_v49 = vsel %vm541_vm2, %v533_v45, %v404_v33 }
  0xed   : > { %v428_v35 = vpop.permute.xlu0 %427  ;;  %v406_v36 = vpop.permute.xlu1 %405 }
  0xee   : > { %v551_v51 = vsel %vm550_vm3, %v542_v49, %v428_v35 }
  0xf1   : > { %v452_v37 = vpop.permute.xlu0 %451  ;;  %v430_v38 = vpop.permute.xlu1 %429 }
  0xf2   : > { %v560_v52 = vsel %vm559_vm4, %v551_v51, %v452_v37 }
  0xf5   : > { %v454_v39 = vpop.permute.xlu1 %453  ;;  %v358_v40 = vpop.permute.xlu0 %357 }
  0xf6   : > { %v525_v42 = vsel %vm523_vm0, %v3354_v12, %v358_v40 }
  0xf7   : > { %v534_v43 = vsel %vm532_vm1, %v525_v42, %v382_v34 }
  0xf8   : > { %v543_v44 = vsel %vm541_vm2, %v534_v43, %v406_v36 }
  0xf9   : > { %v478_v46 = vpop.permute.xlu1 %477  ;;  %v552_v47 = vsel %vm550_vm3, %v543_v44, %v430_v38  ;;  %v476_v48 = vpop.permute.xlu0 %475 }
  0xfa   : > { %v561_v50 = vsel %vm559_vm4, %v552_v47, %v454_v39  ;;  %v569_v54 = vsel %vm568_vm5, %v560_v52, %v476_v48 }
  0xfb   : > { %v570_v53 = vsel %vm568_vm5, %v561_v50, %v478_v46 }
  0xfd   : > { %v502_v55 = vpop.permute.xlu1 %501  ;;  %v500_v56 = vpop.permute.xlu0 %499 }
  0xfe   : > { %v579_v57 = vsel %vm577_vm6, %v570_v53, %v502_v55  ;;  %v578_v58 = vsel %vm577_vm6, %v569_v54, %v500_v56 }
  0xff   : > { %2768 = vmatprep.mubr.msk.f32.mxu0 %vm588_vm7, %v578_v58 }
 0x100   : > { %2769 = vmatmul.mubr.msk.f32.vlgmr.msra.gmra.mxu0 %vm588_vm7, %v579_v57 }
 0x101   : > { %v360_v59 = vpop.permute.xlu0 %359  ;;  %v362_v60 = vpop.permute.xlu1 %361 }
 0x102   : > { %v526_v7 = vsel %vm523_vm0, %v3372_v16, %v360_v59  ;;  %v527_v14 = vsel %vm523_vm0, %v3376_v17, %v362_v60 }
 0x105   : > { %v384_v61 = vpop.permute.xlu0 %383  ;;  %v386_v62 = vpop.permute.xlu1 %385 }
 0x106   : > { %v535_v9 = vsel %vm532_vm1, %v526_v7, %v384_v61  ;;  %v536_v18 = vsel %vm532_vm1, %v527_v14, %v386_v62 }
 0x109   : > { %v408_v63 = vpop.permute.xlu0 %407  ;;  %v410_v0 = vpop.permute.xlu1 %409 }
 0x10a   : > { %v544_v12 = vsel %vm541_vm2, %v535_v9, %v408_v63  ;;  %v545_v16 = vsel %vm541_vm2, %v536_v18, %v410_v0 }
 0x10d   : > { %v432_v1 = vpop.permute.xlu0 %431  ;;  %v434_v2 = vpop.permute.xlu1 %433 }
 0x10e   : > { %v553_v13 = vsel %vm550_vm3, %v544_v12, %v432_v1  ;;  %v554_v24 = vsel %vm550_vm3, %v545_v16, %v434_v2 }
 0x111   : > { %v456_v4 = vpop.permute.xlu0 %455  ;;  %v458_v6 = vpop.permute.xlu1 %457 }
 0x112   : > { %v562_v15 = vsel %vm559_vm4, %v553_v13, %v456_v4  ;;  %v563_v26 = vsel %vm559_vm4, %v554_v24, %v458_v6  ;;  %v3146_v24 = vmov 0.0  }
 0x113   : > { %2780 = vmatprep.subr.mxu1 %v3146_v24  ;;  %2800 = vmatprep.subr.mxu0 %v3146_v24 }
 0x114   : > { %2782 = vmatprep.mubr.msk.f32.mxu1 %vm3147_vm8, %v3146_v24 }
 0x115   : > { %v480_v10 = vpop.permute.xlu0 %479  ;;  %v482_v11 = vpop.permute.xlu1 %481 }
 0x116   : > { %v571_v19 = vsel %vm568_vm5, %v562_v15, %v480_v10  ;;  %v572_v17 = vsel %vm568_vm5, %v563_v26, %v482_v11 }
 0x119   : > { %v504_v20 = vpop.permute.xlu0 %503  ;;  %v364_v21 = vpop.permute.xlu1 %363 }
 0x11a   : > { %v580_v23 = vsel %vm577_vm6, %v571_v19, %v504_v20  ;;  %v528_v44 = vsel %vm523_vm0, %v3396_v22, %v364_v21 }
 0x11b   : > { %2771 = vmatprep.mubr.msk.f32.mxu0 %vm588_vm7, %v580_v23  ;;  %v3145_v23 = vmov 33  }
 0x11c   : > { %2941 = vset.pattern.permute.xlu1 %v3145_v23  ;;  %2940 = vset.pattern.permute.xlu0 %v3145_v23 }
 0x11d   : > { %v506_v28 = vpop.permute.xlu0 %505  ;;  %v366_v30 = vpop.permute.xlu1 %365 }
 0x11e   : > { %v581_v31 = vsel %vm577_vm6, %v572_v17, %v506_v28  ;;  %v529_v22 = vsel %vm523_vm0, %v3403_v25, %v366_v30 }
 0x11f   : > { %2772 = vmatmul.mubr.msk.f32.gmra.mxu0 %vm588_vm7, %v581_v31 }
 0x121   : > { %v388_v32 = vpop.permute.xlu0 %387  ;;  %v390_v33 = vpop.permute.xlu1 %389 }
 0x122   : > { %v537_v45 = vsel %vm532_vm1, %v528_v44, %v388_v32  ;;  %v538_v55 = vsel %vm532_vm1, %v529_v22, %v390_v33  ;;  %v718_v33 = vld [vmem:[%s3329_s23] sm:$0xff]  ;;  %s2569_s23 = sshll.u32 %s263_s5, 4  ;;  %s2570_s23 = int_to_ptr.vmem [resolvable:$true] %s2569_s23 }
 0x125   : > { %v412_v34 = vpop.permute.xlu0 %411  ;;  %v414_v35 = vpop.permute.xlu1 %413 }
 0x126   : > { %v546_v48 = vsel %vm541_vm2, %v537_v45, %v412_v34  ;;  %v547_v58 = vsel %vm541_vm2, %v538_v55, %v414_v35  ;;  %v727_v34 = vrot.slane %v718_v33, %v3342_v5 }
 0x128   : > { %v735_v35 = vcombine.high %v727_v34, %v727_v34 }
 0x129   : > { %v436_v36 = vpop.permute.xlu0 %435  ;;  %v368_v37 = vpop.permute.xlu1 %367 }
 0x12a   : > { %v555_v49 = vsel %vm550_vm3, %v546_v48, %v436_v36  ;;  %v530_v2 = vsel %vm523_vm0, %v3415_v27, %v368_v37  ;;  %v3558_v37 = vrot.slane %v727_v34, %v3342_v5  ;;  %v3151_v48 = vmov 1.0  }
 0x12d   : > { %v438_v38 = vpop.permute.xlu0 %437  ;;  %v460_v39 = vpop.permute.xlu1 %459 }
 0x12e   : > { %v564_v50 = vsel %vm559_vm4, %v555_v49, %v460_v39  ;;  %v556_v59 = vsel %vm550_vm3, %v547_v58, %v438_v38  ;;  %v3565_v39 = vrot.slane %v735_v35, %v3342_v5  ;;  %v720_v49 = vcombine.high %v718_v33, %v718_v33 }
 0x130   : > { %v3590_v44 = vcombine.high %v3565_v39, %v3565_v39 }
 0x131   : > { %v392_v40 = vpop.permute.xlu1 %391  ;;  %v370_v41 = vpop.permute.xlu0 %369 }
 0x132   : > { %v531_v4 = vsel %vm523_vm0, %v3425_v29, %v370_v41  ;;  %v539_v6 = vsel %vm532_vm1, %v530_v2, %v392_v40  ;;  %v780_v40 = vrot.slane %v3558_v37, %v3346_v8  ;;  %v784_v41 = vrot.slane %v3565_v39, %v3346_v8 }
 0x133   : > { %v792_v45 = vrot.slane %v3590_v44, %v3346_v8 }
 0x135   : > { %v484_v42 = vpop.permute.xlu1 %483  ;;  %v462_v43 = vpop.permute.xlu0 %461 }
 0x136   : > { %v573_v51 = vsel %vm568_vm5, %v564_v50, %v484_v42  ;;  %v565_v60 = vsel %vm559_vm4, %v556_v59, %v462_v43  ;;  %v3581_v42 = vcombine.high %v3558_v37, %v3558_v37  ;;  %v734_v50 = vrot.slane %v720_v49, %v3342_v5 }
 0x138   : > { %v788_v43 = vrot.slane %v3581_v42, %v3346_v8 }
 0x139   : > { %v416_v46 = vpop.permute.xlu1 %415  ;;  %v394_v47 = vpop.permute.xlu0 %393 }
 0x13a   : > { %v540_v7 = vsel %vm532_vm1, %v531_v4, %v394_v47  ;;  %v548_v11 = vsel %vm541_vm2, %v539_v6, %v416_v46 }
 0x13d   : > { %v508_v52 = vpop.permute.xlu1 %507  ;;  %v486_v53 = vpop.permute.xlu0 %485 }
 0x13e   : > { %v582_v54 = vsel %vm577_vm6, %v573_v51, %v508_v52  ;;  %v574_v61 = vsel %vm568_vm5, %v565_v60, %v486_v53  ;;  %v3621_v51 = vrot.slane %v734_v50, %v3342_v5  ;;  %v736_v52 = vcombine.high %v734_v50, %v734_v50 }
 0x13f   : > { %2774 = vmatprep.mubr.msk.f32.mxu0 %vm588_vm7, %v582_v54 }
 0x140   : > { %v796_v53 = vrot.slane %v3621_v51, %v3346_v8  ;;  %v3629_v54 = vrot.slane %v736_v52, %v3342_v5 }
 0x141   : > { %v440_v56 = vpop.permute.xlu1 %439  ;;  %v418_v57 = vpop.permute.xlu0 %417 }
 0x142   : > { %v549_v12 = vsel %vm541_vm2, %v540_v7, %v418_v57  ;;  %v557_v13 = vsel %vm550_vm3, %v548_v11, %v440_v56  ;;  %v800_v22 = vrot.slane %v3629_v54, %v3346_v8  ;;  %v3660_v56 = vcombine.high %v3621_v51, %v3621_v51 }
 0x143   : > { %v3665_v57 = vcombine.high %v3629_v54, %v3629_v54 }
 0x144   : > { %v804_v58 = vrot.slane %v3660_v56, %v3346_v8 }
 0x145   : > { %v442_v62 = vpop.permute.xlu1 %441  ;;  %v510_v63 = vpop.permute.xlu0 %509  ;;  %v808_v59 = vrot.slane %v3665_v57, %v3346_v8 }
 0x146   : > { %v583_v0 = vsel %vm577_vm6, %v574_v61, %v510_v63  ;;  %v558_v14 = vsel %vm550_vm3, %v549_v12, %v442_v62 }
 0x147   : > { %2775 = vmatmul.mubr.msk.f32.gmra.mxu0 %vm588_vm7, %v583_v0 }
 0x149   : > { %v466_v1 = vpop.permute.xlu1 %465  ;;  %v464_v25 = vpop.permute.xlu0 %463 }
 0x14a   : > { %v567_v15 = vsel %vm559_vm4, %v558_v14, %v466_v1  ;;  %v566_v27 = vsel %vm559_vm4, %v557_v13, %v464_v25 }
 0x14d   : > { %v490_v9 = vpop.permute.xlu1 %489  ;;  %v488_v10 = vpop.permute.xlu0 %487 }
 0x14e   : > { %v576_v29 = vsel %vm568_vm5, %v567_v15, %v490_v9  ;;  %v575_v18 = vsel %vm568_vm5, %v566_v27, %v488_v10 }
 0x151   : > { %v514_v19 = vpop.permute.xlu1 %513  ;;  %v512_v20 = vpop.permute.xlu0 %511 }
 0x152   : > { %v585_v21 = vsel %vm577_vm6, %v576_v29, %v514_v19  ;;  %v584_v16 = vsel %vm577_vm6, %v575_v18, %v512_v20 }
 0x153   : > { %2777 = vmatprep.mubr.msk.f32.mxu0 %vm588_vm7, %v584_v16 }
 0x154   : > { %2778 = vmatmul.mubr.msk.f32.gmra.mxu0 %vm588_vm7, %v585_v21  ;;  %vm2403_vm7 = vcmask 1045509  }
 0x155   : > { %2802 = vmatprep.mubr.msk.f32.mxu0 %vm3147_vm8, %v3146_v24 }
 0x1c0   : > { %v3527_v26 = vpop.f32.mrf.mxu0 }
 0x1c1   : > { %1113 = vrot.lane.b32.xlu1 %v3527_v26, %s3138_s21 }
 0x1c2   : > { %v3531_v17 = vpop.f32.mrf.mxu0 }
 0x1c3   : > { %1034 = vrot.lane.b32.xlu0 %v3531_v17, %s3138_s21 }
 0x1df   : > { %v3535_v28 = vpop.f32.mrf.mxu0 }
 0x1e0   : > { %1263 = vrot.lane.b32.xlu1 %v3535_v28, %s3138_s21 }
 0x1e1   : > { %v3539_v30 = vpop.f32.mrf.mxu0 }
 0x1e2   : > { %1188 = vrot.lane.b32.xlu0 %v3539_v30, %s3138_s21 }
 0x207   : > { %v3543_v31 = vpop.f32.mrf.mxu0 }
 0x208   : > { %1413 = vrot.lane.b32.xlu1 %v3543_v31, %s3138_s21 }
 0x209   : > { %v3547_v32 = vpop.f32.mrf.mxu0 }
 0x20a   : > { %1338 = vrot.lane.b32.xlu0 %v3547_v32, %s3138_s21 }
 0x214   : > { %v3553_v36 = vpop.f32.mrf.mxu0 }
 0x215   : > { %1563 = vrot.lane.b32.xlu1 %v3553_v36, %s3138_s21 }
 0x216   : > { %v3560_v38 = vpop.f32.mrf.mxu0 }
 0x217   : > { %1488 = vrot.lane.b32.xlu0 %v3560_v38, %s3138_s21 }
 0x219   : > { %1642 = vperm.xlu1 %2941, %v3527_v26  }
 0x21b   : > { %1638 = vperm.xlu0 %2940, %v3531_v17  }
 0x21d   : > { %809 = vrot.lane.b32.xlu1 %v780_v40, %s3148_s13 }
 0x21f   : > { %811 = vrot.lane.b32.xlu0 %v784_v41, %s3148_s13 }
 0x221   : > { %833 = vrot.lane.b32.xlu1 %v780_v40, %s3139_s8 }
 0x223   : > { %1646 = vperm.xlu0 %2940, %v3539_v30  }
 0x225   : > { %835 = vrot.lane.b32.xlu1 %v784_v41, %s3139_s8 }
 0x227   : > { %857 = vrot.lane.b32.xlu0 %v780_v40, %s3149_s24 }
 0x229   : > { %1650 = vperm.xlu1 %2941, %v3535_v28  }
 0x22b   : > { %859 = vrot.lane.b32.xlu0 %v784_v41, %s3149_s24 }
 0x22d   : > { %881 = vrot.lane.b32.xlu1 %v780_v40, %s3138_s21 }
 0x22f   : > { %813 = vrot.lane.b32.xlu0 %v788_v43, %s3148_s13 }
 0x231   : > { %883 = vrot.lane.b32.xlu1 %v784_v41, %s3138_s21 }
 0x233   : > { %905 = vrot.lane.b32.xlu0 %v780_v40, %s3150_s26  ;;  %v1114_v47 = vpop.permute.xlu1 %1113 }
 0x235   : > { %815 = vrot.lane.b32.xlu1 %v792_v45, %s3148_s13  ;;  %v1035_v46 = vpop.permute.xlu0 %1034 }
 0x236   : > { %2781 = vmatpush3.xpose.msk.msra.mxu1 %vm1036_vm9, %v1035_v46 }
 0x237   : > { %837 = vrot.lane.b32.xlu0 %v788_v43, %s3139_s8  ;;  %2785 = vmatprep.subr.mxu1 %v3146_v24 }
 0x239   : > { %907 = vrot.lane.b32.xlu1 %v784_v41, %s3150_s26  ;;  %2783 = vmatmul.mubr.msk.f32.vlgmr.msra.gmra.mxu1 %vm1036_vm9, %v3151_v48 }
 0x23a   : > { %2786 = vmatpush3.xpose.msk.msra.mxu1 %vm1036_vm9, %v1114_v47  ;;  %2787 = vmatprep.mubr.msk.f32.mxu1 %vm3147_vm8, %v3146_v24 }
 0x23b   : > { %929 = vrot.lane.b32.xlu0 %v780_v40, %s3140_s14  ;;  %2790 = vmatprep.subr.mxu1 %v3146_v24 }
 0x23d   : > { %1654 = vperm.xlu1 %2941, %v3547_v32   ;;  %2788 = vmatmul.mubr.msk.f32.vlgmr.msra.gmra.mxu1 %vm1036_vm9, %v3151_v48 }
 0x23e   : > { %2792 = vmatprep.mubr.msk.f32.mxu1 %vm3147_vm8, %v3146_v24 }
 0x23f   : > { %839 = vrot.lane.b32.xlu0 %v792_v45, %s3139_s8 }
 0x241   : > { %861 = vrot.lane.b32.xlu1 %v788_v43, %s3149_s24 }
 0x243   : > { %931 = vrot.lane.b32.xlu0 %v784_v41, %s3140_s14 }
 0x245   : > { %953 = vrot.lane.b32.xlu1 %v780_v40, %s3152_s6 }
 0x247   : > { %1658 = vperm.xlu0 %2940, %v3543_v31  }
 0x249   : > { %863 = vrot.lane.b32.xlu1 %v792_v45, %s3149_s24 }
 0x24b   : > { %885 = vrot.lane.b32.xlu0 %v788_v43, %s3138_s21 }
 0x24d   : > { %955 = vrot.lane.b32.xlu1 %v784_v41, %s3152_s6 }
 0x24f   : > { %817 = vrot.lane.b32.xlu0 %v796_v53, %s3148_s13 }
 0x251   : > { %887 = vrot.lane.b32.xlu1 %v792_v45, %s3138_s21 }
 0x252   : > { %v1264_v5 = vpop.permute.xlu1 %1263 }
 0x253   : > { %909 = vrot.lane.b32.xlu0 %v788_v43, %s3150_s26 }
 0x254   : > { %v1189_v55 = vpop.permute.xlu0 %1188 }
 0x255   : > { %819 = vrot.lane.b32.xlu1 %v800_v22, %s3148_s13  ;;  %2791 = vmatpush3.xpose.msk.msra.mxu1 %vm1036_vm9, %v1189_v55 }
 0x256   : > { %2795 = vmatprep.subr.mxu1 %v3146_v24 }
 0x257   : > { %841 = vrot.lane.b32.xlu0 %v796_v53, %s3139_s8 }
 0x258   : > { %2793 = vmatmul.mubr.msk.f32.vlgmr.msra.gmra.mxu1 %vm1036_vm9, %v3151_v48 }
 0x259   : > { %911 = vrot.lane.b32.xlu1 %v792_v45, %s3150_s26  ;;  %2796 = vmatpush3.xpose.msk.msra.mxu1 %vm1036_vm9, %v1264_v5 }
 0x25a   : > { %2797 = vmatprep.mubr.msk.f32.mxu1 %vm3147_vm8, %v3146_v24  ;;  %2805 = vmatprep.subr.mxu1 %v3146_v24 }
 0x25b   : > { %933 = vrot.lane.b32.xlu0 %v788_v43, %s3140_s14 }
 0x25c   : > { %2798 = vmatmul.mubr.msk.f32.vlgmr.msra.gmra.mxu1 %vm1036_vm9, %v3151_v48 }
 0x25d   : > { %865 = vrot.lane.b32.xlu1 %v796_v53, %s3149_s24  ;;  %2807 = vmatprep.mubr.msk.f32.mxu1 %vm3147_vm8, %v3146_v24 }
 0x25f   : > { %843 = vrot.lane.b32.xlu0 %v800_v22, %s3139_s8 }
 0x261   : > { %957 = vrot.lane.b32.xlu1 %v788_v43, %s3152_s6 }
 0x263   : > { %935 = vrot.lane.b32.xlu0 %v792_v45, %s3140_s14 }
 0x265   : > { %867 = vrot.lane.b32.xlu1 %v800_v22, %s3149_s24 }
 0x267   : > { %1666 = vperm.xlu0 %2940, %v3553_v36  }
 0x269   : > { %959 = vrot.lane.b32.xlu1 %v792_v45, %s3152_s6 }
 0x26b   : > { %889 = vrot.lane.b32.xlu0 %v796_v53, %s3138_s21 }
 0x26d   : > { %891 = vrot.lane.b32.xlu1 %v800_v22, %s3138_s21 }
 0x26f   : > { %821 = vrot.lane.b32.xlu0 %v804_v58, %s3148_s13 }
 0x271   : > { %823 = vrot.lane.b32.xlu1 %v808_v59, %s3148_s13 }
 0x273   : > { %913 = vrot.lane.b32.xlu0 %v796_v53, %s3150_s26 }
 0x275   : > { %915 = vrot.lane.b32.xlu1 %v800_v22, %s3150_s26 }
 0x277   : > { %845 = vrot.lane.b32.xlu0 %v804_v58, %s3139_s8 }
 0x279   : > { %847 = vrot.lane.b32.xlu1 %v808_v59, %s3139_s8 }
 0x27a   : > { %v1414_v60 = vpop.permute.xlu1 %1413 }
 0x27b   : > { %2806 = vmatpush3.xpose.msk.msra.mxu1 %vm1036_vm9, %v1414_v60  ;;  %937 = vrot.lane.b32.xlu0 %v796_v53, %s3140_s14 }
 0x27c   : > { %v1339_v61 = vpop.permute.xlu0 %1338  ;;  %2815 = vmatprep.subr.mxu1 %v3146_v24 }
 0x27d   : > { %939 = vrot.lane.b32.xlu1 %v800_v22, %s3140_s14  ;;  %2801 = vmatpush3.xpose.msk.msra.mxu0 %vm1036_vm9, %v1339_v61 }
 0x27e   : > { %2808 = vmatmul.mubr.msk.f32.vlgmr.msra.gmra.mxu1 %vm1036_vm9, %v3151_v48  ;;  %2810 = vmatprep.subr.mxu0 %v3146_v24 }
 0x27f   : > { %2817 = vmatprep.mubr.msk.f32.mxu1 %vm3147_vm8, %v3146_v24  ;;  %869 = vrot.lane.b32.xlu0 %v804_v58, %s3149_s24 }
 0x280   : > { %2803 = vmatmul.mubr.msk.f32.vlgmr.msra.gmra.mxu0 %vm1036_vm9, %v3151_v48 }
 0x281   : > { %871 = vrot.lane.b32.xlu1 %v808_v59, %s3149_s24  ;;  %2812 = vmatprep.mubr.msk.f32.mxu0 %vm3147_vm8, %v3146_v24 }
 0x283   : > { %961 = vrot.lane.b32.xlu0 %v796_v53, %s3152_s6 }
 0x285   : > { %963 = vrot.lane.b32.xlu1 %v800_v22, %s3152_s6 }
 0x287   : > { %v1564_v62 = vpop.permute.xlu1 %1563  ;;  %893 = vrot.lane.b32.xlu0 %v804_v58, %s3138_s21 }
 0x288   : > { %2816 = vmatpush3.xpose.msk.msra.mxu1 %vm1036_vm9, %v1564_v62 }
 0x289   : > { %1662 = vperm.xlu1 %2941, %v3560_v38   ;;  %v1489_v63 = vpop.permute.xlu0 %1488  ;;  %2825 = vmatprep.subr.mxu1 %v3146_v24 }
 0x28a   : > { %2811 = vmatpush3.xpose.msk.msra.mxu0 %vm1036_vm9, %v1489_v63 }
 0x28b   : > { %2818 = vmatmul.mubr.msk.f32.vlgmr.msra.gmra.mxu1 %vm1036_vm9, %v3151_v48  ;;  %2820 = vmatprep.subr.mxu0 %v3146_v24 }
 0x28c   : > { %2826 = vmatpush3.msra.mxu1 %v3527_v26  ;;  %895 = vrot.lane.b32.xlu0 %v808_v59, %s3138_s21 }
 0x28d   : > { %2813 = vmatmul.mubr.msk.f32.vlgmr.msra.gmra.mxu0 %vm1036_vm9, %v3151_v48  ;;  %917 = vrot.lane.b32.xlu1 %v804_v58, %s3150_s26  ;;  %vm2409_vm9 = vcmask 1047559  }
 0x28e   : > { %2821 = vmatpush3.msra.mxu0 %v3531_v17  ;;  %2822 = vmatprep.mubr.msk.f32.mxu0 %vm3147_vm8, %v3146_v24 }
 0x28f   : > { %2830 = vmatprep.subr.mxu0 %v3146_v24  ;;  %2827 = vmatprep.mubr.msk.f32.mxu1 %vm3147_vm8, %v3146_v24 }
 0x290   : > { %919 = vrot.lane.b32.xlu0 %v808_v59, %s3150_s26  ;;  %2835 = vmatprep.subr.mxu1 %v3146_v24 }
 0x291   : > { %941 = vrot.lane.b32.xlu1 %v804_v58, %s3140_s14 }
 0x294   : > { %943 = vrot.lane.b32.xlu0 %v808_v59, %s3140_s14  ;;  %v1643_v1 = vpop.permute.xlu1 %1642  ;;  %s3997_s14 = scalar_lea.hbm %s4038_s4, %s2721_s28 }
 0x295   : > { %965 = vrot.lane.b32.xlu1 %v804_v58, %s3152_s6 }
 0x296   : > { %v1639_v0 = vpop.permute.xlu0 %1638 }
 0x298   : > { %967 = vrot.lane.b32.xlu0 %v808_v59, %s3152_s6  ;;  %v810_v2 = vpop.permute.xlu1 %809 }
 0x299   : > { %v977_v45 = vsel %vm523_vm0, %v3558_v37, %v810_v2 }
 0x29a   : > { %v812_v25 = vpop.permute.xlu0 %811 }
 0x29b   : > { %v978_v48 = vsel %vm523_vm0, %v3565_v39, %v812_v25 }
 0x29c   : > { %v834_v6 = vpop.permute.xlu1 %833 }
 0x29d   : > { %v985_v46 = vsel %vm532_vm1, %v977_v45, %v834_v6 }
 0x29e   : > { %v3722_v4 = vpop.permute.xlu0 %1646 }
 0x2a0   : > { %v836_v9 = vpop.permute.xlu1 %835 }
 0x2a1   : > { %v986_v52 = vsel %vm532_vm1, %v978_v48, %v836_v9 }
 0x2a2   : > { %v858_v7 = vpop.permute.xlu0 %857 }
 0x2a3   : > { %v993_v50 = vsel %vm541_vm2, %v985_v46, %v858_v7 }
 0x2a4   : > { %v3724_v11 = vpop.permute.xlu1 %1650 }
 0x2a6   : > { %v860_v10 = vpop.permute.xlu0 %859 }
 0x2a7   : > { %v994_v55 = vsel %vm541_vm2, %v986_v52, %v860_v10 }
 0x2a8   : > { %v882_v13 = vpop.permute.xlu1 %881 }
 0x2a9   : > { %v1001_v53 = vsel %vm550_vm3, %v993_v50, %v882_v13 }
 0x2aa   : > { %v3726_v12 = vpop.permute.xlu0 %813 }
 0x2ab   : > { %v979_v52 = vsel %vm523_vm0, %v3581_v42, %v3726_v12 }
 0x2ac   : > { %v884_v15 = vpop.permute.xlu1 %883 }
 0x2ad   : > { %v1002_v58 = vsel %vm550_vm3, %v994_v55, %v884_v15 }
 0x2ae   : > { %v906_v14 = vpop.permute.xlu0 %905 }
 0x2af   : > { %v1009_v37 = vsel %vm559_vm4, %v1001_v53, %v906_v14 }
 0x2b0   : > { %v816_v29 = vpop.permute.xlu1 %815 }
 0x2b2   : > { %v838_v27 = vpop.permute.xlu0 %837 }
 0x2b3   : > { %v987_v55 = vsel %vm532_vm1, %v979_v52, %v838_v27 }
 0x2b4   : > { %v908_v19 = vpop.permute.xlu1 %907 }
 0x2b5   : > { %v1010_v63 = vsel %vm559_vm4, %v1002_v58, %v908_v19 }
 0x2b6   : > { %v930_v18 = vpop.permute.xlu0 %929 }
 0x2b7   : > { %v1017_v39 = vsel %vm568_vm5, %v1009_v37, %v930_v18 }
 0x2b8   : > { %v3730_v21 = vpop.permute.xlu1 %1654 }
 0x2ba   : > { %v3728_v20 = vpop.permute.xlu0 %839 }
 0x2bc   : > { %v862_v23 = vpop.permute.xlu1 %861 }
 0x2bd   : > { %v995_v58 = vsel %vm541_vm2, %v987_v55, %v862_v23 }
 0x2be   : > { %v932_v16 = vpop.permute.xlu0 %931 }
 0x2bf   : > { %v1018_v13 = vsel %vm568_vm5, %v1010_v63, %v932_v16 }
 0x2c0   : > { %v954_v17 = vpop.permute.xlu1 %953 }
 0x2c1   : > { %v1025_v7 = vsel %vm577_vm6, %v1017_v39, %v954_v17 }
 0x2c2   : > { %v3732_v26 = vpop.permute.xlu0 %1658 }
 0x2c4   : > { %v864_v34 = vpop.permute.xlu1 %863 }
 0x2c6   : > { %v886_v33 = vpop.permute.xlu0 %885 }
 0x2c7   : > { %v1003_v39 = vsel %vm550_vm3, %v995_v58, %v886_v33 }
 0x2c8   : > { %v956_v40 = vpop.permute.xlu1 %955 }
 0x2c9   : > { %v1026_v45 = vsel %vm577_vm6, %v1018_v13, %v956_v40  ;;  %v980_v40 = vsel %vm523_vm0, %v3590_v44, %v816_v29 }
 0x2ca   : > { %v3734_v35 = vpop.permute.xlu0 %817 }
 0x2cc   : > { %v888_v43 = vpop.permute.xlu1 %887 }
 0x2ce   : > { %v910_v41 = vpop.permute.xlu0 %909 }
 0x2cf   : > { %v1011_v42 = vsel %vm559_vm4, %v1003_v39, %v910_v41 }
 0x2d0   : > { %v3743_v49 = vpop.permute.xlu1 %819 }
 0x2d1   : > { %v982_v55 = vsel %vm523_vm0, %v3629_v54, %v3743_v49 }
 0x2d2   : > { %v3739_v47 = vpop.permute.xlu0 %841 }
 0x2d4   : > { %v912_v5 = vpop.permute.xlu1 %911 }
 0x2d6   : > { %v934_v22 = vpop.permute.xlu0 %933 }
 0x2d7   : > { %v1019_v29 = vsel %vm568_vm5, %v1011_v42, %v934_v22 }
 0x2d8   : > { %v3755_v2 = vpop.permute.xlu1 %865 }
 0x2da   : > { %v3752_v61 = vpop.permute.xlu0 %843 }
 0x2dc   : > { %v958_v48 = vpop.permute.xlu1 %957 }
 0x2de   : > { %v936_v18 = vpop.permute.xlu0 %935 }
 0x2e0   : > { %v868_v50 = vpop.permute.xlu1 %867 }
 0x2e2   : > { %v3768_v16 = vpop.permute.xlu0 %1666 }
 0x2e4   : > { %v960_v37 = vpop.permute.xlu1 %959 }
 0x2e6   : > { %v890_v53 = vpop.permute.xlu0 %889 }
 0x2e8   : > { %v892_v63 = vpop.permute.xlu1 %891 }
 0x2f9   : > { %v1108_v59 = vpop.f32.mrf.mxu1 }
 0x2fa   : > { %v1669_v60 = vadd.f32 %v1639_v0, %v1108_v59  ;;  %v822_v59 = vpop.permute.xlu0 %821 }
 0x2fb   : > { %v2784_v62 = vpop.f32.mrf.mxu1 }
 0x2fc   : > { %vm1677_vm10 = vcmp.ge.f32.partialorder %v1669_v60, 0.0  ;;  %v1685_v25 = vmul.f32 0.2, %v1669_v60 }
 0x2fd   : > { %v1183_v6 = vpop.f32.mrf.mxu1 }
 0x2fe   : > { %v1670_v9 = vadd.f32 %v1643_v1, %v1183_v6  ;;  %v1693_v10 = vsel %vm1677_vm10, %v1669_v60, %v1685_v25  ;;  %v988_v60 = vsel %vm532_vm1, %v980_v40, %v3728_v20  ;;  %v914_v12 = vpop.permute.xlu0 %913  ;;  %v981_v40 = vsel %vm523_vm0, %v3621_v51, %v3734_v35 }
 0x2ff   : > { %v3759_v0 = vadd.f32 %v1693_v10, %v1025_v7  ;;  %v2789_v14 = vpop.f32.mrf.mxu1  ;;  %v996_v62 = vsel %vm541_vm2, %v988_v60, %v864_v34  ;;  %v824_v7 = vpop.permute.xlu1 %823  ;;  %v1027_v34 = vsel %vm577_vm6, %v1019_v29, %v958_v48  ;;  %v990_v60 = vsel %vm532_vm1, %v982_v55, %v3752_v61 }
 0x300   : > { %vm1678_vm12 = vcmp.ge.f32.partialorder %v1670_v9, 0.0  ;;  %v1686_v15 = vmul.f32 0.2, %v1670_v9  ;;  %v1004_v27 = vsel %vm550_vm3, %v996_v62, %v888_v43  ;;  %v989_v39 = vsel %vm532_vm1, %v981_v40, %v3739_v47 }
 0x301   : > { %v1710_v19 = vsel %vm1709_vm11, %v3759_v0, -inf  ;;  %v1012_v6 = vsel %vm559_vm4, %v1004_v27, %v912_v5  ;;  %v998_v62 = vsel %vm541_vm2, %v990_v60, %v868_v50  ;;  %v997_v42 = vsel %vm541_vm2, %v989_v39, %v3755_v2 }
 0x302   : > { %1711 = vmax.xlane.f32.xlu1 %v1710_v19  ;;  %v1694_v46 = vsel %vm1678_vm12, %v1670_v9, %v1686_v15  ;;  %v846_v9 = vpop.permute.xlu0 %845  ;;  %v1020_v43 = vsel %vm568_vm5, %v1012_v6, %v936_v18  ;;  %v1006_v54 = vsel %vm550_vm3, %v998_v62, %v892_v63  ;;  %v1005_v49 = vsel %vm550_vm3, %v997_v42, %v890_v53 }
 0x303   : > { %v3764_v17 = vadd.f32 %v1694_v46, %v1026_v45  ;;  %v1028_v14 = vsel %vm577_vm6, %v1020_v43, %v960_v37  ;;  %v916_v15 = vpop.permute.xlu1 %915  ;;  %v984_v35 = vsel %vm523_vm0, %v3665_v57, %v824_v7  ;;  %v983_v47 = vsel %vm523_vm0, %v3660_v56, %v822_v59 }
 0x304   : > { %v1014_v51 = vsel %vm559_vm4, %v1006_v54, %v916_v15  ;;  %v1013_v50 = vsel %vm559_vm4, %v1005_v49, %v914_v12  ;;  %v991_v7 = vsel %vm532_vm1, %v983_v47, %v846_v9  ;;  %vm2529_vm10 = vcmask 261120  }
 0x305   : > { %v1713_v1 = vsel %vm1709_vm11, %v3764_v17, -inf  ;;  %vm2533_vm12 = vcmask 785408  }
 0x306   : > { %1714 = vmax.xlane.f32.xlu0 %v1713_v1  ;;  %v938_v46 = vpop.permute.xlu0 %937 }
 0x307   : > { %v848_v18 = vpop.permute.xlu1 %847  ;;  %v1021_v56 = vsel %vm568_vm5, %v1013_v50, %v938_v46 }
 0x308   : > { %v992_v53 = vsel %vm532_vm1, %v984_v35, %v848_v18 }
 0x30a   : > { %v870_v48 = vpop.permute.xlu0 %869 }
 0x30b   : > { %v940_v1 = vpop.permute.xlu1 %939 }
 0x30e   : > { %v962_v52 = vpop.permute.xlu0 %961 }
 0x30f   : > { %v872_v37 = vpop.permute.xlu1 %871  ;;  %v1029_v43 = vsel %vm577_vm6, %v1021_v56, %v962_v52 }
 0x312   : > { %v894_v58 = vpop.permute.xlu0 %893 }
 0x313   : > { %v964_v27 = vpop.permute.xlu1 %963 }
 0x318   : > { %v1258_v25 = vpop.f32.mrf.mxu1 }
 0x319   : > { %v1671_v44 = vadd.f32 %v3722_v4, %v1258_v25  ;;  %v896_v25 = vpop.permute.xlu0 %895 }
 0x31a   : > { %v2794_v23 = vpop.f32.mrf.mxu1 }
 0x31b   : > { %vm1679_vm13 = vcmp.ge.f32.partialorder %v1671_v44, 0.0  ;;  %v1687_v20 = vmul.f32 0.2, %v1671_v44  ;;  %v1022_v23 = vsel %vm568_vm5, %v1014_v51, %v940_v1 }
 0x31c   : > { %v1333_v33 = vpop.f32.mrf.mxu1  ;;  %v1030_v12 = vsel %vm577_vm6, %v1022_v23, %v964_v27 }
 0x31d   : > { %v1672_v41 = vadd.f32 %v3724_v11, %v1333_v33  ;;  %v1695_v10 = vsel %vm1679_vm13, %v1671_v44, %v1687_v20  ;;  %v1663_v44 = vpop.permute.xlu1 %1662  ;;  %v920_v29 = vpop.permute.xlu0 %919 }
 0x31e   : > { %v3789_v13 = vadd.f32 %v1695_v10, %v1027_v34  ;;  %v2799_v4 = vpop.f32.mrf.mxu1 }
 0x31f   : > { %vm1680_vm14 = vcmp.ge.f32.partialorder %v1672_v41, 0.0  ;;  %v1688_v22 = vmul.f32 0.2, %v1672_v41 }
 0x320   : > { %v1716_v5 = vsel %vm1709_vm11, %v3789_v13, -inf }
 0x321   : > { %1717 = vmax.xlane.f32.xlu0 %v1716_v5  ;;  %v1696_v19 = vsel %vm1680_vm14, %v1672_v41, %v1688_v22  ;;  %v918_v33 = vpop.permute.xlu1 %917  ;;  %v1000_v41 = vsel %vm541_vm2, %v992_v53, %v872_v37  ;;  %v944_v22 = vpop.permute.xlu0 %943 }
 0x322   : > { %v3794_v45 = vadd.f32 %v1696_v19, %v1028_v14  ;;  %v1008_v14 = vsel %vm550_vm3, %v1000_v41, %v896_v25 }
 0x324   : > { %v1719_v11 = vsel %vm1709_vm11, %v3794_v45, -inf }
 0x325   : > { %1720 = vmax.xlane.f32.xlu1 %v1719_v11  ;;  %v942_v46 = vpop.permute.xlu1 %941  ;;  %v1016_v11 = vsel %vm559_vm4, %v1008_v14, %v920_v29  ;;  %v968_v1 = vpop.permute.xlu0 %967 }
 0x326   : > { %v1024_v55 = vsel %vm568_vm5, %v1016_v11, %v944_v22 }
 0x327   : > { %v1032_v27 = vsel %vm577_vm6, %v1024_v55, %v968_v1 }
 0x33e   : > { %v1483_v61 = vpop.f32.mrf.mxu1 }
 0x33f   : > { %v1674_v2 = vadd.f32 %v3732_v26, %v1483_v61 }
 0x340   : > { %v1408_v63 = vpop.f32.mrf.mxu0  ;;  %v2809_v6 = vpop.f32.mrf.mxu1 }
 0x341   : > { %vm1682_vm15 = vcmp.ge.f32.partialorder %v1674_v2, 0.0  ;;  %v1690_v20 = vmul.f32 0.2, %v1674_v2  ;;  %v1673_v57 = vadd.f32 %v3730_v21, %v1408_v63  ;;  %v999_v21 = vsel %vm541_vm2, %v991_v7, %v870_v48 }
 0x342   : > { %v2804_v59 = vpop.f32.mrf.mxu0  ;;  %v1007_v19 = vsel %vm550_vm3, %v999_v21, %v894_v58  ;;  %v966_v58 = vpop.permute.xlu1 %965  ;;  %vm2391_vm3 = vcmask 1041409  }
 0x343   : > { %vm1681_vm0 = vcmp.ge.f32.partialorder %v1673_v57, 0.0  ;;  %v1689_v26 = vmul.f32 0.2, %v1673_v57  ;;  %v1698_v34 = vsel %vm1682_vm15, %v1674_v2, %v1690_v20  ;;  %v1015_v48 = vsel %vm559_vm4, %v1007_v19, %v918_v33 }
 0x344   : > { %v3827_v10 = vadd.f32 %v1698_v34, %v1030_v12  ;;  %v1023_v62 = vsel %vm568_vm5, %v1015_v48, %v942_v46  ;;  %vm2394_vm4 = vcmask 1042434   ;;  %vm2397_vm5 = vcmask 1043459  }
 0x345   : > { %v1697_v4 = vsel %vm1681_vm0, %v1673_v57, %v1689_v26  ;;  %v1031_v51 = vsel %vm577_vm6, %v1023_v62, %v966_v58  ;;  %vm2400_vm6 = vcmask 1044484  }
 0x346   : > { %v1725_v9 = vsel %vm1709_vm11, %v3827_v10, -inf  ;;  %v3833_v5 = vadd.f32 %v1697_v4, %v1029_v43 }
 0x347   : > { %1726 = vmax.xlane.f32.xlu1 %v1725_v9 }
 0x348   : > { %v1722_v15 = vsel %vm1709_vm11, %v3833_v5, -inf }
 0x349   : > { %1723 = vmax.xlane.f32.xlu0 %v1722_v15 }
 0x34b   : > { %v1633_v18 = vpop.f32.mrf.mxu1 }
 0x34c   : > { %v1676_v52 = vadd.f32 %v3768_v16, %v1633_v18 }
 0x34d   : > { %v1558_v40 = vpop.f32.mrf.mxu0  ;;  %v2819_v37 = vpop.f32.mrf.mxu1 }
 0x34e   : > { %vm1684_vm1 = vcmp.ge.f32.partialorder %v1676_v52, 0.0  ;;  %v1692_v60 = vmul.f32 0.2, %v1676_v52  ;;  %v1675_v39 = vadd.f32 %v1663_v44, %v1558_v40 }
 0x34f   : > { %v2814_v42 = vpop.f32.mrf.mxu0 }
 0x350   : > { %vm1683_vm2 = vcmp.ge.f32.partialorder %v1675_v39, 0.0  ;;  %v1691_v25 = vmul.f32 0.2, %v1675_v39  ;;  %v1700_v54 = vsel %vm1684_vm1, %v1676_v52, %v1692_v60 }
 0x351   : > { %v1708_v49 = vadd.f32 %v1700_v54, %v1032_v27 }
 0x352   : > { %v1699_v16 = vsel %vm1683_vm2, %v1675_v39, %v1691_v25 }
 0x353   : > { %v1731_v35 = vsel %vm1709_vm11, %v1708_v49, -inf  ;;  %v1707_v61 = vadd.f32 %v1699_v16, %v1031_v51 }
 0x354   : > { %1732 = vmax.xlane.f32.xlu1 %v1731_v35 }
 0x355   : > { %v1728_v47 = vsel %vm1709_vm11, %v1707_v61, -inf }
 0x356   : > { %1729 = vmax.xlane.f32.xlu0 %v1728_v47 }
 0x38b   : > { %v1712_v50 = vpop.xlane.xlu1 %1711 }
 0x38c   : > { %v1734_v44 = vsub.f32 %v3759_v0, %v1712_v50 }
 0x38e   : > { %v1742_v29 = vmul.f32 1.442695, %v1734_v44 }
 0x38f   : > { %v1715_v2 = vpop.xlane.xlu0 %1714 }
 0x390   : > { %2944 = vpow2.f32 %v1742_v29  ;;  %v1735_v23 = vsub.f32 %v3764_v17, %v1715_v2 }
 0x392   : > { %v1744_v63 = vmul.f32 1.442695, %v1735_v23 }
 0x394   : > { %2946 = vpow2.f32 %v1744_v63 }
 0x39d   : > { %v2945_v6 = vpop.eup %2944 }
 0x39e   : > { %v1758_v53 = vsel %vm1709_vm11, %v2945_v6, 0.0 }
 0x39f   : > { %1759 = vadd.xlane.f32.xlu0 %v1758_v53 }
 0x3a1   : > { %v2947_v20 = vpop.eup %2946 }
 0x3a2   : > { %v1761_v57 = vsel %vm1709_vm11, %v2947_v20, 0.0 }
 0x3a3   : > { %1762 = vadd.xlane.f32.xlu1 %v1761_v57 }
 0x3aa   : > { %v1718_v7 = vpop.xlane.xlu0 %1717 }
 0x3ab   : > { %v1736_v56 = vsub.f32 %v3789_v13, %v1718_v7 }
 0x3ad   : > { %v1746_v59 = vmul.f32 1.442695, %v1736_v56 }
 0x3ae   : > { %v1721_v0 = vpop.xlane.xlu1 %1720 }
 0x3af   : > { %2948 = vpow2.f32 %v1746_v59  ;;  %v1737_v12 = vsub.f32 %v3794_v45, %v1721_v0 }
 0x3b1   : > { %v1748_v33 = vmul.f32 1.442695, %v1737_v12 }
 0x3b3   : > { %2950 = vpow2.f32 %v1748_v33 }
 0x3bc   : > { %v2949_v17 = vpop.eup %2948 }
 0x3bd   : > { %v1764_v26 = vsel %vm1709_vm11, %v2949_v17, 0.0 }
 0x3be   : > { %1765 = vadd.xlane.f32.xlu0 %v1764_v26 }
 0x3c0   : > { %v2951_v34 = vpop.eup %2950 }
 0x3c1   : > { %v1767_v41 = vsel %vm1709_vm11, %v2951_v34, 0.0 }
 0x3c2   : > { %1768 = vadd.xlane.f32.xlu1 %v1767_v41 }
 0x3d0   : > { %v1727_v43 = vpop.xlane.xlu1 %1726 }
 0x3d1   : > { %v1739_v4 = vsub.f32 %v3827_v10, %v1727_v43 }
 0x3d2   : > { %v1724_v21 = vpop.xlane.xlu0 %1723 }
 0x3d3   : > { %v1752_v13 = vmul.f32 1.442695, %v1739_v4  ;;  %v1738_v22 = vsub.f32 %v3833_v5, %v1724_v21 }
 0x3d5   : > { %2952 = vpow2.f32 %v1752_v13  ;;  %v1750_v9 = vmul.f32 1.442695, %v1738_v22 }
 0x3d7   : > { %2954 = vpow2.f32 %v1750_v9 }
 0x3dd   : > { %v1733_v45 = vpop.xlane.xlu1 %1732 }
 0x3de   : > { %v1741_v14 = vsub.f32 %v1708_v49, %v1733_v45 }
 0x3df   : > { %v1730_v15 = vpop.xlane.xlu0 %1729 }
 0x3e0   : > { %v1756_v19 = vmul.f32 1.442695, %v1741_v14  ;;  %v1740_v46 = vsub.f32 %v1707_v61, %v1730_v15 }
 0x3e2   : > { %v2953_v11 = vpop.eup %2952  ;;  %2956 = vpow2.f32 %v1756_v19  ;;  %v1754_v18 = vmul.f32 1.442695, %v1740_v46 }
 0x3e3   : > { %v1773_v48 = vsel %vm1709_vm11, %v2953_v11, 0.0 }
 0x3e4   : > { %v2955_v1 = vpop.eup %2954  ;;  %2958 = vpow2.f32 %v1754_v18  ;;  %1774 = vadd.xlane.f32.xlu1 %v1773_v48 }
 0x3e5   : > { %v1770_v10 = vsel %vm1709_vm11, %v2955_v1, 0.0 }
 0x3e6   : > { %1771 = vadd.xlane.f32.xlu0 %v1770_v10 }
 0x3ef   : > { %v2957_v5 = vpop.eup %2956 }
 0x3f0   : > { %v1779_v52 = vsel %vm1709_vm11, %v2957_v5, 0.0 }
 0x3f1   : > { %v2959_v55 = vpop.eup %2958  ;;  %1780 = vadd.xlane.f32.xlu1 %v1779_v52 }
 0x3f2   : > { %v1776_v40 = vsel %vm1709_vm11, %v2959_v55, 0.0 }
 0x3f3   : > { %1777 = vadd.xlane.f32.xlu0 %v1776_v40 }
 0x428   : > { %v1760_v37 = vpop.xlane.xlu0 %1759 }
 0x429   : > { %2960 = vrcp.f32 %v1760_v37 }
 0x42c   : > { %v1763_v60 = vpop.xlane.xlu1 %1762 }
 0x42d   : > { %2962 = vrcp.f32 %v1763_v60 }
 0x436   : > { %v2961_v39 = vpop.eup %2960 }
 0x437   : > { %v1783_v62 = vmul.f32 %v2961_v39, %v2945_v6 }
 0x439   : > { %2823 = vmatmul.mubr.msk.f32.vlgmr.msra.gmra.mxu0 %vm1709_vm11, %v1783_v62 }
 0x43a   : > { %v2963_v58 = vpop.eup %2962  ;;  %2831 = vmatpush3.msra.mxu0 %v3539_v30  ;;  %2832 = vmatprep.mubr.msk.f32.mxu0 %vm3147_vm8, %v3146_v24 }
 0x43b   : > { %v1785_v42 = vmul.f32 %v2963_v58, %v2947_v20  ;;  %2840 = vmatprep.subr.mxu0 %v3146_v24 }
 0x43d   : > { %2828 = vmatmul.mubr.msk.f32.vlgmr.msra.gmra.mxu1 %vm1709_vm11, %v1785_v42 }
 0x43e   : > { %2836 = vmatpush3.msra.mxu1 %v3535_v28  ;;  %2837 = vmatprep.mubr.msk.f32.mxu1 %vm3147_vm8, %v3146_v24 }
 0x43f   : > { %2845 = vmatprep.subr.mxu1 %v3146_v24 }
 0x447   : > { %v1766_v27 = vpop.xlane.xlu0 %1765 }
 0x448   : > { %2964 = vrcp.f32 %v1766_v27 }
 0x44b   : > { %v1769_v25 = vpop.xlane.xlu1 %1768 }
 0x44c   : > { %2966 = vrcp.f32 %v1769_v25 }
 0x455   : > { %v2965_v30 = vpop.eup %2964 }
 0x456   : > { %v1787_v54 = vmul.f32 %v2965_v30, %v2949_v17 }
 0x458   : > { %2833 = vmatmul.mubr.msk.f32.vlgmr.msra.gmra.mxu0 %vm1709_vm11, %v1787_v54 }
 0x459   : > { %v2967_v49 = vpop.eup %2966  ;;  %2841 = vmatpush3.msra.mxu0 %v3547_v32  ;;  %2842 = vmatprep.mubr.msk.f32.mxu0 %vm3147_vm8, %v3146_v24 }
 0x45a   : > { %v1789_v28 = vmul.f32 %v2967_v49, %v2951_v34  ;;  %2850 = vmatprep.subr.mxu0 %v3146_v24 }
 0x45c   : > { %2838 = vmatmul.mubr.msk.f32.vlgmr.msra.gmra.mxu1 %vm1709_vm11, %v1789_v28 }
 0x45d   : > { %2846 = vmatpush3.msra.mxu1 %v3543_v31  ;;  %2847 = vmatprep.mubr.msk.f32.mxu1 %vm3147_vm8, %v3146_v24 }
 0x45e   : > { %2855 = vmatprep.subr.mxu1 %v3146_v24 }
 0x46d   : > { %v1775_v51 = vpop.xlane.xlu1 %1774 }
 0x46e   : > { %2968 = vrcp.f32 %v1775_v51 }
 0x46f   : > { %v1772_v16 = vpop.xlane.xlu0 %1771 }
 0x470   : > { %2970 = vrcp.f32 %v1772_v16 }
 0x47a   : > { %v1781_v32 = vpop.xlane.xlu1 %1780 }
 0x47b   : > { %v2969_v35 = vpop.eup %2968  ;;  %2972 = vrcp.f32 %v1781_v32 }
 0x47c   : > { %v1778_v61 = vpop.xlane.xlu0 %1777  ;;  %v1793_v47 = vmul.f32 %v2969_v35, %v2953_v11 }
 0x47d   : > { %v2971_v50 = vpop.eup %2970  ;;  %2974 = vrcp.f32 %v1778_v61 }
 0x47e   : > { %2848 = vmatmul.mubr.msk.f32.vlgmr.msra.gmra.mxu1 %vm1709_vm11, %v1793_v47  ;;  %v1791_v44 = vmul.f32 %v2971_v50, %v2955_v1 }
 0x47f   : > { %2856 = vmatpush3.msra.mxu1 %v3553_v36  ;;  %2857 = vmatprep.mubr.msk.f32.mxu1 %vm3147_vm8, %v3146_v24 }
 0x480   : > { %2843 = vmatmul.mubr.msk.f32.vlgmr.msra.gmra.mxu0 %vm1709_vm11, %v1791_v44 }
 0x481   : > { %2851 = vmatpush3.msra.mxu0 %v3560_v38  ;;  %2852 = vmatprep.mubr.msk.f32.mxu0 %vm3147_vm8, %v3146_v24  ;;  %vm2406_vm8 = vcmask 1046534  }
 0x488   : > { %v2973_v31 = vpop.eup %2972 }
 0x489   : > { %v1797_v29 = vmul.f32 %v2973_v31, %v2957_v5 }
 0x48a   : > { %v2975_v2 = vpop.eup %2974 }
 0x48b   : > { %2858 = vmatmul.mubr.msk.f32.vlgmr.msra.gmra.mxu1 %vm1709_vm11, %v1797_v29  ;;  %v1795_v23 = vmul.f32 %v2975_v2, %v2959_v55 }
 0x48d   : > { %2853 = vmatmul.mubr.msk.f32.vlgmr.msra.gmra.mxu0 %vm1709_vm11, %v1795_v23  ;;  %vm2531_vm11 = vcmask 523264  }
 0x4f9   : > { %v1867_v63 = vpop.f32.mrf.mxu0 }
 0x4fa   : > { %v2412_v6 = vrot.slane %v1867_v63, 1  ;;  %v2429_v53 = vrot.slane %v1867_v63, 2  ;;  %v2446_v20 = vrot.slane %v1867_v63, 3  ;;  %v2463_v57 = vrot.slane %v1867_v63, 4 }
 0x4fb   : > { %v2824_v36 = vpop.f32.mrf.mxu0  ;;  %v2478_v7 = vrot.slane %v1867_v63, 5  ;;  %v2495_v38 = vrot.slane %v1867_v63, 6  ;;  %v2512_v56 = vrot.slane %v1867_v63, 7 }
 0x4fd   : > { %v1940_v59 = vpop.f32.mrf.mxu1 }
 0x4fe   : > { %v2390_v24 = vrot.slane %v1940_v59, 7  ;;  %v2430_v0 = vrot.slane %v1940_v59, 1  ;;  %v2447_v12 = vrot.slane %v1940_v59, 2  ;;  %v2464_v33 = vrot.slane %v1940_v59, 3 }
 0x4ff   : > { %v2479_v17 = vrot.slane %v1940_v59, 4  ;;  %v2496_v26 = vrot.slane %v1940_v59, 5  ;;  %v2513_v34 = vrot.slane %v1940_v59, 6  ;;  %v2829_v41 = vpop.f32.mrf.mxu1  ;;  %v2413_v43 = vsel %vm2391_vm3, %v1940_v59, %v2412_v6 }
 0x500   : > { %v2431_v4 = vsel %vm2391_vm3, %v2430_v0, %v2429_v53  ;;  %v2448_v21 = vsel %vm2391_vm3, %v2447_v12, %v2446_v20  ;;  %v2465_v13 = vsel %vm2391_vm3, %v2464_v33, %v2463_v57  ;;  %v2392_v22 = vsel %vm2391_vm3, %v2390_v24, %v1867_v63 }
 0x501   : > { %v2480_v9 = vsel %vm2391_vm3, %v2479_v17, %v2478_v7  ;;  %v2497_v45 = vsel %vm2391_vm3, %v2496_v26, %v2495_v38  ;;  %v3900_v14 = vsel %vm2391_vm3, %v2513_v34, %v2512_v56 }
 0x518   : > { %v3902_v15 = vpop.f32.mrf.mxu0 }
 0x519   : > { %v2466_v46 = vrot.slane %v3902_v15, 2  ;;  %v2393_v11 = vrot.slane %v3902_v15, 6  ;;  %v2481_v42 = vrot.slane %v3902_v15, 3  ;;  %v2414_v30 = vrot.slane %v3902_v15, 7 }
 0x51a   : > { %v2834_v19 = vpop.f32.mrf.mxu0  ;;  %v2432_v54 = vsel %vm2394_vm4, %v3902_v15, %v2431_v4  ;;  %v2498_v49 = vrot.slane %v3902_v15, 4  ;;  %v2449_v28 = vrot.slane %v3902_v15, 1  ;;  %v2515_v53 = vrot.slane %v3902_v15, 5 }
 0x51b   : > { %v2467_v48 = vsel %vm2394_vm4, %v2466_v46, %v2465_v13  ;;  %v2395_v1 = vsel %vm2394_vm4, %v2393_v11, %v2392_v22  ;;  %v2482_v63 = vsel %vm2394_vm4, %v2481_v42, %v2480_v9  ;;  %v2415_v36 = vsel %vm2394_vm4, %v2414_v30, %v2413_v43 }
 0x51c   : > { %v3906_v18 = vpop.f32.mrf.mxu1  ;;  %v2499_v6 = vsel %vm2394_vm4, %v2498_v49, %v2497_v45  ;;  %v2450_v7 = vsel %vm2394_vm4, %v2449_v28, %v2448_v21  ;;  %v2516_v21 = vsel %vm2394_vm4, %v2515_v53, %v3900_v14 }
 0x51d   : > { %v2468_v5 = vrot.slane %v3906_v18, 1  ;;  %v2396_v52 = vrot.slane %v3906_v18, 5  ;;  %v2483_v51 = vrot.slane %v3906_v18, 2  ;;  %v2416_v16 = vrot.slane %v3906_v18, 6 }
 0x51e   : > { %v2839_v10 = vpop.f32.mrf.mxu1  ;;  %v2433_v32 = vrot.slane %v3906_v18, 7  ;;  %v2500_v47 = vrot.slane %v3906_v18, 3  ;;  %v2517_v38 = vrot.slane %v3906_v18, 4  ;;  %v2451_v22 = vsel %vm2397_vm5, %v3906_v18, %v2450_v7 }
 0x51f   : > { %v2469_v55 = vsel %vm2397_vm5, %v2468_v5, %v2467_v48  ;;  %v2398_v40 = vsel %vm2397_vm5, %v2396_v52, %v2395_v1  ;;  %v2484_v20 = vsel %vm2397_vm5, %v2483_v51, %v2482_v63  ;;  %v2417_v57 = vsel %vm2397_vm5, %v2416_v16, %v2415_v36 }
 0x520   : > { %v2434_v59 = vsel %vm2397_vm5, %v2433_v32, %v2432_v54  ;;  %v2501_v24 = vsel %vm2397_vm5, %v2500_v47, %v2499_v6  ;;  %v2518_v45 = vsel %vm2397_vm5, %v2517_v38, %v2516_v21  ;;  %v2546_v7 = vsub.s32 1, %v3339_v3  ;;  %v2538_v38 = vld [vmem:[%s4037_s3] sm:$0x3] }
 0x53e   : > { %v3914_v37 = vpop.f32.mrf.mxu1 }
 0x53f   : > { %v2471_v62 = vrot.slane %v3914_v37, 7  ;;  %v2402_v35 = vrot.slane %v3914_v37, 3  ;;  %v2420_v41 = vrot.slane %v3914_v37, 4  ;;  %v2437_v43 = vrot.slane %v3914_v37, 5 }
 0x540   : > { %v2159_v60 = vpop.f32.mrf.mxu0  ;;  %v2849_v39 = vpop.f32.mrf.mxu1  ;;  %v2504_v4 = vrot.slane %v3914_v37, 1  ;;  %v2454_v9 = vrot.slane %v3914_v37, 6 }
 0x541   : > { %v2470_v27 = vsel %vm2400_vm6, %v2159_v60, %v2469_v55  ;;  %v2399_v25 = vrot.slane %v2159_v60, 4  ;;  %v2485_v61 = vrot.slane %v2159_v60, 1  ;;  %v2418_v31 = vrot.slane %v2159_v60, 5 }
 0x542   : > { %v2844_v58 = vpop.f32.mrf.mxu0  ;;  %v2472_v50 = vsel %vm2403_vm7, %v2471_v62, %v2470_v27  ;;  %v2435_v29 = vrot.slane %v2159_v60, 6  ;;  %v2502_v2 = vrot.slane %v2159_v60, 2  ;;  %v2452_v0 = vrot.slane %v2159_v60, 7 }
 0x543   : > { %v2401_v44 = vsel %vm2400_vm6, %v2399_v25, %v2398_v40  ;;  %v2486_v56 = vsel %vm2400_vm6, %v2485_v61, %v2484_v20  ;;  %v2419_v12 = vsel %vm2400_vm6, %v2418_v31, %v2417_v57  ;;  %v2519_v26 = vrot.slane %v2159_v60, 3 }
 0x544   : > { %v2404_v23 = vsel %vm2403_vm7, %v2402_v35, %v2401_v44  ;;  %v2436_v33 = vsel %vm2400_vm6, %v2435_v29, %v2434_v59  ;;  %v2503_v17 = vsel %vm2400_vm6, %v2502_v2, %v2501_v24  ;;  %v2487_v13 = vsel %vm2403_vm7, %v3914_v37, %v2486_v56 }
 0x545   : > { %v2421_v46 = vsel %vm2403_vm7, %v2420_v41, %v2419_v12  ;;  %v2438_v11 = vsel %vm2403_vm7, %v2437_v43, %v2436_v33  ;;  %v2505_v48 = vsel %vm2403_vm7, %v2504_v4, %v2503_v17  ;;  %v2453_v14 = vsel %vm2400_vm6, %v2452_v0, %v2451_v22 }
 0x546   : > { %v2520_v52 = vsel %vm2400_vm6, %v2519_v26, %v2518_v45  ;;  %v2521_v61 = vrot.slane %v3914_v37, 2  ;;  %v2455_v63 = vsel %vm2403_vm7, %v2454_v9, %v2453_v14  ;;  %v2543_v24 = vrot.slane %v2538_v38, %v3346_v8 }
 0x547   : > { %v2547_v0 = vrot.slane %v2538_v38, %v2546_v7 }
 0x548   : > { %v2522_v36 = vsel %vm2403_vm7, %v2521_v61, %v2520_v52 }
 0x54b   : > { %v2378_v34 = vpop.f32.mrf.mxu1 }
 0x54c   : > { %v2490_v55 = vrot.slane %v2378_v34, 6  ;;  %v2424_v40 = vrot.slane %v2378_v34, 2  ;;  %v2507_v60 = vrot.slane %v2378_v34, 7  ;;  %v2475_v42 = vrot.slane %v2378_v34, 5 }
 0x54d   : > { %v2305_v15 = vpop.f32.mrf.mxu0  ;;  %v2859_v19 = vpop.f32.mrf.mxu1  ;;  %v2408_v49 = vrot.slane %v2378_v34, 1  ;;  %v2441_v35 = vrot.slane %v2378_v34, 3 }
 0x54e   : > { %v2488_v1 = vrot.slane %v2305_v15, 7  ;;  %v2422_v10 = vrot.slane %v2305_v15, 3  ;;  %v2439_v5 = vrot.slane %v2305_v15, 4  ;;  %v2473_v39 = vrot.slane %v2305_v15, 6 }
 0x54f   : > { %v2854_v18 = vpop.f32.mrf.mxu0  ;;  %v2405_v27 = vrot.slane %v2305_v15, 2  ;;  %v2506_v54 = vsel %vm2406_vm8, %v2305_v15, %v2505_v48  ;;  %v2456_v51 = vrot.slane %v2305_v15, 5  ;;  %v2523_v16 = vrot.slane %v2305_v15, 1 }
 0x550   : > { %v2489_v62 = vsel %vm2406_vm8, %v2488_v1, %v2487_v13  ;;  %v2423_v58 = vsel %vm2406_vm8, %v2422_v10, %v2421_v46  ;;  %v2440_v28 = vsel %vm2406_vm8, %v2439_v5, %v2438_v11  ;;  %v2474_v32 = vsel %vm2406_vm8, %v2473_v39, %v2472_v50 }
 0x551   : > { %v2491_v25 = vsel %vm2409_vm9, %v2490_v55, %v2489_v62  ;;  %v2425_v30 = vsel %vm2409_vm9, %v2424_v40, %v2423_v58  ;;  %v2476_v47 = vsel %vm2409_vm9, %v2475_v42, %v2474_v32  ;;  %v2407_v44 = vsel %vm2406_vm8, %v2405_v27, %v2404_v23 }
 0x552   : > { %2492 = vrot.lane.b32.xlu1 %v2491_v25, %s3143_s29  ;;  %2426 = vrot.lane.b32.xlu0 %v2425_v30, %s3143_s29  ;;  %v2410_v31 = vsel %vm2409_vm9, %v2408_v49, %v2407_v44  ;;  %v2442_v29 = vsel %vm2409_vm9, %v2441_v35, %v2440_v28  ;;  %v2508_v2 = vsel %vm2409_vm9, %v2507_v60, %v2506_v54  ;;  %v2458_v23 = vrot.slane %v2378_v34, 4  ;;  %s3062_s29 = sshll.u32 %s3153_s12, 4  ;;  %s3063_s29 = int_to_ptr.vmem [resolvable:$false] %s3062_s29 }
 0x553   : > { %v2457_v37 = vsel %vm2406_vm8, %v2456_v51, %v2455_v63  ;;  %v2524_v50 = vsel %vm2406_vm8, %v2523_v16, %v2522_v36  ;;  %s3064_s30 = scalar_lea.vmem %s3063_s29, 512  ;;  %p3065_p13 = scmp.lt.s32.totalorder %s2570_s23, %s3063_s29 }
 0x554   : > { %v2459_v6 = vsel %vm2409_vm9, %v2458_v23, %v2457_v37  ;;  %v2525_v53 = vsel %vm2409_vm9, %v2378_v34, %v2524_v50 }
 0x556   : > { %2443 = vrot.lane.b32.xlu1 %v2442_v29, %s3141_s11  ;;  %2509 = vrot.lane.b32.xlu0 %v2508_v2, %s3141_s11  ;;  %s3058_s11 = scalar_lea.vmem %s2570_s23, 256 }
 0x557   : > { %p3059_p3 = scmp.ne.s32.totalorder %s2570_s23, %s3058_s11  ;;  %p3066_p0 = scmp.lt.s32.totalorder %s3064_s30, %s3058_s11 }
 0x559   : > { %p3060_p10 = pnand %p3059_p3, %p4056_p12  ;;  %p3067_p5 = por %p3066_p0, %p3065_p13 }
 0x55a   : > { %2460 = vrot.lane.b32.xlu1 %v2459_v6, %s3138_s21  ;;  %2526 = vrot.lane.b32.xlu0 %v2525_v53, %s3138_s21 }
 0x55b   : > { %p3061_p2 = pneg %p3060_p10 }
 0x55d   : > { %p3068_p9 = pnand %p3067_p5, %p3061_p2 }
 0x5c4   : > { %v2493_v20 = vpop.permute.xlu1 %2492  ;;  %v2427_v57 = vpop.permute.xlu0 %2426 }
 0x5c5   : > { %v2535_v12 = vsel %vm2529_vm10, %v2476_v47, %v2493_v20  ;;  %v2530_v33 = vsel %vm2529_vm10, %v2410_v31, %v2427_v57 }
 0x5c8   : > { %v2444_v56 = vpop.permute.xlu1 %2443  ;;  %v2510_v59 = vpop.permute.xlu0 %2509 }
 0x5c9   : > { %v2532_v3 = vsel %vm2531_vm11, %v2530_v33, %v2444_v56  ;;  %v2536_v17 = vsel %vm2531_vm11, %v2535_v12, %v2510_v59 }
 0x5cc   : > { %v2461_v26 = vpop.permute.xlu1 %2460  ;;  %v2527_v34 = vpop.permute.xlu0 %2526 }
 0x5cd   : > { %v2534_v41 = vsel %vm2533_vm12, %v2532_v3, %v2461_v26  ;;  %v2537_v43 = vsel %vm2533_vm12, %v2536_v17, %v2527_v34 }
 0x5ce   : > { %v2550_v4 = vadd.f32 %v2543_v24, %v2534_v41  ;;  %v2551_v21 = vadd.f32 %v2547_v0, %v2537_v43 }
 0x5d0   : > { %2552 = vst [vmem:[%s263_s5] sm:$0xff] %v2550_v4  ;;  %2553 = vst [vmem:[%s263_s5 + $0x8] sm:$0xff] %v2551_v21 }
 0x5d1   : > { %3071 = shalt.err (!%p3068_p9)
}
 0x5d2   : > { %s3072_s13 = scalar_lea.hbm %s3997_s14, 256  ;;  %s3076_s26 = scalar_lea.hbm %s4038_s4, 512 }
 0x5d3   : > { %p3073_p1 = scmp.ne.s32.totalorder %s3997_s14, %s3072_s13  ;;  %p3077_p7 = scmp.lt.s32.totalorder %s3997_s14, %s4038_s4 }
 0x5d4   : > { %p3078_p11 = scmp.lt.s32.totalorder %s3076_s26, %s3072_s13 }
 0x5d5   : > { %p3074_p4 = pnand %p3073_p1, %p4056_p12 }
 0x5d6   : > { %p3079_p8 = por %p3078_p11, %p3077_p7 }
 0x5d7   : > { %p3075_p6 = pneg %p3074_p4 }
 0x5d9   : > { %p3080_p3 = pnand %p3079_p8, %p3075_p6 }
 0x5db   : > { %3083 = shalt.err (!%p3080_p3)
}
 0x5dc   : > { %2868 = dma.vmem_to_hbm [thread:$0]  (%p4056_p12), %s2570_s23, 256, %s3997_s14, %s2555_s19  }
 0x5dd PF: > { %s2581_s20 = sand.u32 1, %s3118_s15   ;;  %p4057_p10 = scmp.ne.s32.totalorder %s4045_s22, 0 }
 0x5de   : > { %p4058_p2 = scmp.ge.s32.totalorder %s3130_s18, 2  ;;  %s2582_s25 = scalar_lea.sflag [#allocation4], %s2581_s20 }
 0x5e0   : > { %p2882_p13 = pnand %p4058_p2, %p4057_p10 }
 0x5e2   : > { %p2883_p0 = pneg %p2882_p13 }
 0x5e4   : > { %3113 = dma.done.wait (%p2883_p0), %s2582_s25, 256  }
 0x5e5   : > { %3115 = vsyncadd (%p2883_p0), %s2582_s25, 4294967040  ;;  %p20_p5 = scmp.ge.s32.totalorder %s3233_s27, 4   ;;  %s4059_s15 = smov %s3122_s16 }
 0x5e6   : > { %s4060_s16 = smov %s3126_s17  ;;  %s4061_s17 = smov %s3250_s9 }
 0x5e7   : > { %s4062_s18 = smov %s3233_s27  ;;  %22 = sbr.rel (!%p20_p5) target bundleno = 9 (0x9), region = 98 }
 0x5ec   :  { %2587 = vsyncpa [#allocation3], 1 }
 0x5ed   :  { %2589 = vsyncpa [#allocation3 + $0x1], 1 }
 0x5ee   :  { %2590 = vsyncpa [#allocation6], 1 }
 0x5ef   :  { %2592 = vsyncpa [#allocation6 + $0x1], 1 }
 0x5f0   :  { %2593 = vsyncpa [#allocation4], 1 }
 0x5f1   :  { %2595 = vsyncpa [#allocation4 + $0x1], 1 }

</bundles_post_ra>
